<compile_context>
chip_gen: v7x
topology: tpu7x:2x2x1
jax: 0.10.0
libtpu: 0.0.40
codegen_flags: <defaults>
</compile_context>

<pallas_src>
import jax
import jax.numpy as jnp
from jax.experimental import pallas as pl
from jax.experimental.pallas import tpu as pltpu

# ----------------------------------------------------------------------------
# Small synthetic config (roles mirror cfg['MODEL'] / cfg['DATASET'])
# ----------------------------------------------------------------------------
CFG = dict(
    B=2,               # batch
    T=10,              # total input frames
    C=3,               # RGB channels
    IMG=8,             # spatial H = W
    VID_NFRAMES=3,     # sliding window length -> Wn = T - nf + 1 = 8 windows
    VID_EMBED_SIZE=16,
    VID_NCLASSES=10,   # omnivore "heads" output dim (synthetic)
    GRU_INPUT_SIZE=16,
    GRU_NUM_LAYERS=2,
    NSTEPS=9,
    NMACHINESTATES=3,
    VID_MEAN=(0.485, 0.456, 0.406),
    VID_STD=(0.229, 0.224, 0.225),
)

SKILL_STEPS = {
    "M2": jnp.array([10, 12, 2, 15, 5, 11, 14, 6, 18], jnp.int32),
    "M3": jnp.array([1, 7, 0, 17, 14, 18], jnp.int32),
    "M5": jnp.array([7, 3, 4, 13, 1, 18], jnp.int32),
    "R18": jnp.array([1, 7, 16, 8, 9, 18], jnp.int32),
}

# Whole-array-in-VMEM spec (everything here is a few KB).
_VMEM_SPEC = pl.BlockSpec(memory_space=pltpu.MemorySpace.VMEM)


# ----------------------------------------------------------------------------
# Single fused kernel: frontend + 2-layer GRU + dense_steps + gru_states
#                      + dense_state_machine
# ----------------------------------------------------------------------------
def _make_stepnet_kernel(batch, n_win):
    """Kernel factory; closes over the static batch / window counts."""

    def kernel(x_ref, win_ref, wf_ref, bf_ref, perm_bm_ref, perm_tm_ref,
               wi_ref, wh_ref, bi_ref, bh_ref,
               w_st_ref, b_st_ref,
               wis_ref, whs_ref, bis_ref, bhs_ref,
               w_sm_ref, b_sm_ref,
               full_ref, y_steps_ref, y_sm_ref):
        f32 = jnp.float32
        num_layers = wi_ref.shape[0]
        hid = wh_ref.shape[-1] // 3

        def gru_cell(gi, h, wh, bh):
            """PyTorch GRU cell given precomputed input gates gi = x@[Wir|Wiz|Win]+bi."""
            gh = jnp.dot(h, wh, preferred_element_type=f32) + bh
            r = jax.nn.sigmoid(gi[:, :hid] + gh[:, :hid])
            z = jax.nn.sigmoid(gi[:, hid:2 * hid] + gh[:, hid:2 * hid])
            n = jnp.tanh(gi[:, 2 * hid:] + r * gh[:, 2 * hid:])
            return (1.0 - z) * n + z * h

        # ---- frontend (backbone stand-in): folded constant chain -> 2 matmuls
        # TODO(synk): real Omnivore Swin video backbone has no clean Pallas
        # equivalent; stand-in = pooled clip features -> dense embedding -> heads.
        t0 = jnp.dot(x_ref[...], wf_ref[...], preferred_element_type=f32)         # (T*B, G+NC)
        y = jnp.dot(win_ref[...], t0, preferred_element_type=f32) + bf_ref[...]   # (Wn*B, G+NC)
        full_ref[...] = y                        # ONE store; raw heads = cols hid:
        emb = jnp.maximum(y[:, :hid], 0.0)       # video_dense + ReLU (offset-0 lane slice)
        # (dropout = identity at inference)

        # ---- main GRU (seq = windows, batch = B); h0 = 0; statically unrolled.
        # Layer-0 input gates for every window in ONE batched matmul.
        gi0_all = jnp.dot(emb, wi_ref[0], preferred_element_type=f32) + bi_ref[0]  # (Wn*B, 3G)
        wi_l = [wi_ref[l] for l in range(num_layers)]
        wh_l = [wh_ref[l] for l in range(num_layers)]
        bi_l = [bi_ref[l] for l in range(num_layers)]
        bh_l = [bh_ref[l] for l in range(num_layers)]

        h = [jnp.zeros((batch, hid), f32) for _ in range(num_layers)]
        h_last = []
        for t in range(n_win):
            h[0] = gru_cell(gi0_all[t * batch:(t + 1) * batch, :],
                            h[0], wh_l[0], bh_l[0])
            xt = h[0]
            for l in range(1, num_layers):        # inter-layer dropout = identity
                gi = jnp.dot(xt, wi_l[l], preferred_element_type=f32) + bi_l[l]
                h[l] = gru_cell(gi, h[l], wh_l[l], bh_l[l])
                xt = h[l]
            h_last.append(xt)                     # last-layer hidden at time t: (B, G)

        H_tm = jnp.concatenate(h_last, axis=0)    # (Wn*B, G), time-major (row = t*B + b)

        # Time-major -> batch-major reorder as a tiny permutation matmul (MXU),
        # then gru_dense_steps ONCE on the whole stacked sequence.
        H_bm = jnp.dot(perm_bm_ref[...], H_tm, preferred_element_type=f32)        # (B*Wn, G)
        steps_bm = (jnp.dot(H_bm, w_st_ref[...], preferred_element_type=f32)
                    + b_st_ref[...])                                              # (B*Wn, NS)
        y_steps_ref[...] = steps_bm               # ONE store; wrapper reshape -> (B, Wn, NS)

        # ---- gru_states: sequence axis = batch dim B, "batch" = Wn windows
        # (exactly as the PyTorch module feeds y_hat_steps to nn.GRU).  h0 = 0.
        # Input gates for ALL sequence steps in one matmul.
        gis_all = (jnp.dot(steps_bm, wis_ref[...], preferred_element_type=f32)
                   + bis_ref[...])                                                # (B*Wn, 3G)
        whs, bhs = whs_ref[...], bhs_ref[...]
        hs = jnp.zeros((n_win, hid), f32)
        hs_list = []
        for s in range(batch):
            hs = gru_cell(gis_all[s * n_win:(s + 1) * n_win, :], hs, whs, bhs)
            hs_list.append(hs)                    # (Wn, G) per sequence step

        # Reorder to (Wn, B, .) time-major so the wrapper epilogue is a pure
        # reshape (bug-for-bug permute-then-reshape of the torch reference),
        # then gru_dense_state_machine ONCE and a single store.
        hs_tm = jnp.dot(perm_tm_ref[...], jnp.concatenate(hs_list, axis=0),
                        preferred_element_type=f32)                               # (Wn*B, G)
        y_sm_ref[...] = (jnp.dot(hs_tm, w_sm_ref[...], preferred_element_type=f32)
                         + b_sm_ref[...])                                         # (Wn*B, (NS-1)*NM)

    return kernel


# ----------------------------------------------------------------------------
# Deterministic parameter init (synthetic; no checkpoint load)
# ----------------------------------------------------------------------------
def _init_gru_params(key, in_dim, hid):
    k = jax.random.split(key, 4)
    s = 0.1
    return dict(
        wi=s * jax.random.normal(k[0], (in_dim, 3 * hid), jnp.float32),   # [Wir|Wiz|Win]
        wh=s * jax.random.normal(k[1], (hid, 3 * hid), jnp.float32),      # [Whr|Whz|Whn]
        bi=s * jax.random.normal(k[2], (1, 3 * hid), jnp.float32),
        bh=s * jax.random.normal(k[3], (1, 3 * hid), jnp.float32),
    )


def init_params(key, cfg):
    ks = jax.random.split(key, 16)
    s = 0.1
    C, E, G = cfg["C"], cfg["VID_EMBED_SIZE"], cfg["GRU_INPUT_SIZE"]
    NS, NM, NC = cfg["NSTEPS"], cfg["NMACHINESTATES"], cfg["VID_NCLASSES"]
    L = cfg["GRU_NUM_LAYERS"]
    m = lambda k, a, b: s * jax.random.normal(k, (a, b), jnp.float32)
    v = lambda k, n: s * jax.random.normal(k, (1, n), jnp.float32)

    w_heads, b_heads = m(ks[2], E, NC), v(ks[3], NC)
    w_vd, b_vd = m(ks[4], E, G), v(ks[5], G)

    # GRU_INPUT_SIZE == hidden size, so all layers share dims and can be stacked.
    layers = [_init_gru_params(ks[6 + l], G, G) for l in range(L)]
    gru = dict(
        wi=jnp.stack([p["wi"] for p in layers]),   # (L, G, 3G)
        wh=jnp.stack([p["wh"] for p in layers]),   # (L, G, 3G)
        bi=jnp.stack([p["bi"] for p in layers]),   # (L, 1, 3G)
        bh=jnp.stack([p["bh"] for p in layers]),   # (L, 1, 3G)
    )

    return dict(
        w_backbone=m(ks[0], C, E), b_backbone=v(ks[1], E),
        # video_dense | heads fused along the output (lane) dim.  video_dense
        # FIRST so the in-kernel emb slice starts at lane offset 0 (no rotate).
        w_hv=jnp.concatenate([w_vd, w_heads], axis=1),       # (E, G+NC)
        b_hv=jnp.concatenate([b_vd, b_heads], axis=1),       # (1, G+NC)
        gru=gru,
        gru_states=_init_gru_params(ks[6 + L], NS, G),
        w_steps=m(ks[7 + L], G, NS), b_steps=v(ks[8 + L], NS),
        w_sm=m(ks[9 + L], G, (NS - 1) * NM), b_sm=v(ks[10 + L], (NS - 1) * NM),
    )


# ----------------------------------------------------------------------------
# StepNet.forward
# ----------------------------------------------------------------------------
def stepnet_forward(x, params, cfg, skill=None):
    # x: (B, T, C, H, W) float32 (pre-permute torch layout)
    B, T, C, H, W = x.shape
    nf = cfg["VID_NFRAMES"]
    Wn = T - nf + 1
    NS, NM = cfg["NSTEPS"], cfg["NMACHINESTATES"]
    NC, G = cfg["VID_NCLASSES"], cfg["GRU_INPUT_SIZE"]
    HW = H * W
    f32 = jnp.float32

    # Frame-major 2D slab: row = t*B + b, col = c*HW + hw (wrapper-side layout).
    x2d = jnp.transpose(x, (1, 0, 2, 3, 4)).reshape(T * B, C * HW)

    # --- fold the constant linear chain (spatial mean-pool -> per-channel
    # normalize -> backbone dense -> heads|video_dense) into ONE weight matrix
    # + ONE bias row.  Valid because mean/std are per-channel constants and
    # every win_mat row sums to exactly 1. ---
    pool_mat = jnp.kron(jnp.eye(C, dtype=f32),
                        jnp.full((HW, 1), 1.0 / HW, f32))            # (C*HW, C)
    mean = jnp.asarray(cfg["VID_MEAN"], f32).reshape(1, C)
    inv_std = 1.0 / jnp.asarray(cfg["VID_STD"], f32).reshape(1, C)
    w_fold = (pool_mat * inv_std) @ params["w_backbone"] @ params["w_hv"]   # (C*HW, G+NC)
    b_fold = ((params["b_backbone"] - (mean * inv_std) @ params["w_backbone"])
              @ params["w_hv"] + params["b_hv"])                            # (1, G+NC)

    # Banded window-average matrix: out row (w, b) = mean over frames
    # t in [w, w + nf) of input row (t, b), same b.  Each row sums to 1.
    w_row = jnp.repeat(jnp.arange(Wn), B)      # (Wn*B,)
    b_row = jnp.tile(jnp.arange(B), Wn)
    t_col = jnp.repeat(jnp.arange(T), B)       # (T*B,)
    b_col = jnp.tile(jnp.arange(B), T)
    band = (t_col[None, :] >= w_row[:, None]) & (t_col[None, :] < w_row[:, None] + nf)
    win_mat = (band & (b_col[None, :] == b_row[:, None])).astype(f32) / float(nf)

    # Tiny (B*Wn, B*Wn) permutation matrices (constant-folded by XLA):
    #   perm_bm: batch-major row b*Wn+t  <-  time-major row t*B+b
    #   perm_tm: time-major row t*B+b    <-  batch-major row b*Wn+t
    i = jnp.arange(B * Wn)
    perm_bm = jax.nn.one_hot((i % Wn) * B + i // Wn, B * Wn, dtype=f32)
    perm_tm = jax.nn.one_hot((i % B) * Wn + i // B, B * Wn, dtype=f32)

    gp, sp = params["gru"], params["gru_states"]
    full2d, y_steps2d, y_sm2d = pl.pallas_call(
        _make_stepnet_kernel(B, Wn),
        out_shape=(jax.ShapeDtypeStruct((Wn * B, G + NC), f32),
                   jax.ShapeDtypeStruct((B * Wn, NS), f32),
                   jax.ShapeDtypeStruct((Wn * B, (NS - 1) * NM), f32)),
        in_specs=[_VMEM_SPEC] * 18,
        out_specs=(_VMEM_SPEC, _VMEM_SPEC, _VMEM_SPEC),
    )(x2d, win_mat, w_fold, b_fold, perm_bm, perm_tm,
      gp["wi"], gp["wh"], gp["bi"], gp["bh"],
      params["w_steps"], params["b_steps"],
      sp["wi"], sp["wh"], sp["bi"], sp["bh"],
      params["w_sm"], params["b_sm"])

    # Epilogue: pure slices / metadata reshapes, no XLA transposes.
    omni_outs = full2d[:, G:].reshape(Wn, B, NC)   # == torch.stack over t of (B, NC)
    y_hat_steps = y_steps2d.reshape(B, Wn, NS)     # == dense_steps(gru_out).permute(1,0,2)
    # Exact torch epilogue: dense_sm(gru_states_out).permute(1,0,2).reshape(B, Wn, NS-1, -1).
    # The kernel already emits (Wn, B, .) order, so this is a pure reshape
    # (reproduced bug-for-bug with the reference).
    y_hat_state_machine = y_sm2d.reshape(B, Wn, NS - 1, NM)

    if skill:
        return y_hat_steps, y_hat_state_machine, omni_outs, SKILL_STEPS[skill]
    return y_hat_steps, y_hat_state_machine, omni_outs


if __name__ == "__main__":
    cfg = dict(CFG)
    key = jax.random.PRNGKey(0)
    kx, kp = jax.random.split(key)
    x = jax.random.normal(
        kx, (cfg["B"], cfg["T"], cfg["C"], cfg["IMG"], cfg["IMG"]), jnp.float32)
    params = init_params(kp, cfg)

    fwd = jax.jit(lambda xx, pp: stepnet_forward(xx, pp, cfg, skill=None))
    outs = fwd(x, params)
    jax.block_until_ready(outs)
    print("KERNEL_OK")
</pallas_src>

<mosaic_0001>
module attributes {stable_mosaic.version = 11 : i64} {
  func.func @kernel(%arg0: memref<20x192xf32, #tpu.memory_space<vmem>>, %arg1: memref<16x20xf32, #tpu.memory_space<vmem>>, %arg2: memref<192x26xf32, #tpu.memory_space<vmem>>, %arg3: memref<1x26xf32, #tpu.memory_space<vmem>>, %arg4: memref<16x16xf32, #tpu.memory_space<vmem>>, %arg5: memref<16x16xf32, #tpu.memory_space<vmem>>, %arg6: memref<2x16x48xf32, #tpu.memory_space<vmem>>, %arg7: memref<2x16x48xf32, #tpu.memory_space<vmem>>, %arg8: memref<2x1x48xf32, #tpu.memory_space<vmem>>, %arg9: memref<2x1x48xf32, #tpu.memory_space<vmem>>, %arg10: memref<16x9xf32, #tpu.memory_space<vmem>>, %arg11: memref<1x9xf32, #tpu.memory_space<vmem>>, %arg12: memref<9x48xf32, #tpu.memory_space<vmem>>, %arg13: memref<16x48xf32, #tpu.memory_space<vmem>>, %arg14: memref<1x48xf32, #tpu.memory_space<vmem>>, %arg15: memref<1x48xf32, #tpu.memory_space<vmem>>, %arg16: memref<16x24xf32, #tpu.memory_space<vmem>>, %arg17: memref<1x24xf32, #tpu.memory_space<vmem>>, %arg18: memref<16x26xf32, #tpu.memory_space<vmem>>, %arg19: memref<16x9xf32, #tpu.memory_space<vmem>>, %arg20: memref<16x24xf32, #tpu.memory_space<vmem>>) attributes {dimension_semantics = [], scalar_prefetch = 0 : i64, scratch_operands = 0 : i64, tpu.core_type = #tpu.core_type<tc>} {
    %c0 = arith.constant 0 : index
    %c0_0 = arith.constant 0 : index
    %0 = vector.load %arg0[%c0, %c0_0] : memref<20x192xf32, #tpu.memory_space<vmem>>, vector<20x192xf32>
    %c0_1 = arith.constant 0 : index
    %c0_2 = arith.constant 0 : index
    %1 = vector.load %arg2[%c0_1, %c0_2] : memref<192x26xf32, #tpu.memory_space<vmem>>, vector<192x26xf32>
    %cst = arith.constant dense<0.000000e+00> : vector<20x26xf32>
    %2 = tpu.matmul %0, %1, %cst {dimension_numbers = #tpu.dot_dimension_numbers<[1], [0], [0], [1], [0, 0, 1, 1], [], []>} : vector<20x192xf32>, vector<192x26xf32>, vector<20x26xf32> -> vector<20x26xf32>
    %c0_3 = arith.constant 0 : index
    %c0_4 = arith.constant 0 : index
    %3 = vector.load %arg1[%c0_3, %c0_4] : memref<16x20xf32, #tpu.memory_space<vmem>>, vector<16x20xf32>
    %cst_5 = arith.constant dense<0.000000e+00> : vector<16x26xf32>
    %4 = tpu.matmul %3, %2, %cst_5 {dimension_numbers = #tpu.dot_dimension_numbers<[1], [0], [0], [1], [0, 0, 1, 1], [], []>} : vector<16x20xf32>, vector<20x26xf32>, vector<16x26xf32> -> vector<16x26xf32>
    %c0_6 = arith.constant 0 : index
    %c0_7 = arith.constant 0 : index
    %5 = vector.load %arg3[%c0_6, %c0_7] : memref<1x26xf32, #tpu.memory_space<vmem>>, vector<1x26xf32>
    %6 = vector.broadcast %5 : vector<1x26xf32> to vector<16x26xf32>
    %7 = arith.addf %4, %6 : vector<16x26xf32>
    %c0_8 = arith.constant 0 : index
    %c0_9 = arith.constant 0 : index
    %8 = vector.load %arg18[%c0_8, %c0_9] : memref<16x26xf32, #tpu.memory_space<vmem>>, vector<16x26xf32>
    tpu.vector_store %arg18[%c0_8, %c0_9], %7 {strides = array<i32>} : memref<16x26xf32, #tpu.memory_space<vmem>>, vector<16x26xf32>,
    %9 = vector.extract_strided_slice %7 {offsets = [0, 0], sizes = [16, 16], strides = [1, 1]} : vector<16x26xf32> to vector<16x16xf32>
    %cst_10 = arith.constant 0.000000e+00 : f32
    %10 = vector.broadcast %cst_10 : f32 to vector<16x16xf32>
    %11 = arith.maximumf %9, %10 : vector<16x16xf32>
    %c0_11 = arith.constant 0 : index
    %c0_12 = arith.constant 0 : index
    %c0_13 = arith.constant 0 : index
    %12 = vector.load %arg6[%c0_11, %c0_12, %c0_13] : memref<2x16x48xf32, #tpu.memory_space<vmem>>, vector<1x16x48xf32>
    %13 = vector.shape_cast %12 : vector<1x16x48xf32> to vector<16x48xf32>
    %cst_14 = arith.constant dense<0.000000e+00> : vector<16x48xf32>
    %14 = tpu.matmul %11, %13, %cst_14 {dimension_numbers = #tpu.dot_dimension_numbers<[1], [0], [0], [1], [0, 0, 1, 1], [], []>} : vector<16x16xf32>, vector<16x48xf32>, vector<16x48xf32> -> vector<16x48xf32>
    %c0_15 = arith.constant 0 : index
    %c0_16 = arith.constant 0 : index
    %c0_17 = arith.constant 0 : index
    %15 = vector.load %arg8[%c0_15, %c0_16, %c0_17] : memref<2x1x48xf32, #tpu.memory_space<vmem>>, vector<1x1x48xf32>
    %16 = vector.shape_cast %15 : vector<1x1x48xf32> to vector<1x48xf32>
    %17 = vector.broadcast %16 : vector<1x48xf32> to vector<16x48xf32>
    %18 = arith.addf %14, %17 : vector<16x48xf32>
    %c1 = arith.constant 1 : index
    %c0_18 = arith.constant 0 : index
    %c0_19 = arith.constant 0 : index
    %19 = vector.load %arg6[%c1, %c0_18, %c0_19] : memref<2x16x48xf32, #tpu.memory_space<vmem>>, vector<1x16x48xf32>
    %20 = vector.shape_cast %19 : vector<1x16x48xf32> to vector<16x48xf32>
    %c0_20 = arith.constant 0 : index
    %c0_21 = arith.constant 0 : index
    %c0_22 = arith.constant 0 : index
    %21 = vector.load %arg7[%c0_20, %c0_21, %c0_22] : memref<2x16x48xf32, #tpu.memory_space<vmem>>, vector<1x16x48xf32>
    %22 = vector.shape_cast %21 : vector<1x16x48xf32> to vector<16x48xf32>
    %c1_23 = arith.constant 1 : index
    %c0_24 = arith.constant 0 : index
    %c0_25 = arith.constant 0 : index
    %23 = vector.load %arg7[%c1_23, %c0_24, %c0_25] : memref<2x16x48xf32, #tpu.memory_space<vmem>>, vector<1x16x48xf32>
    %24 = vector.shape_cast %23 : vector<1x16x48xf32> to vector<16x48xf32>
    %c1_26 = arith.constant 1 : index
    %c0_27 = arith.constant 0 : index
    %c0_28 = arith.constant 0 : index
    %25 = vector.load %arg8[%c1_26, %c0_27, %c0_28] : memref<2x1x48xf32, #tpu.memory_space<vmem>>, vector<1x1x48xf32>
    %26 = vector.shape_cast %25 : vector<1x1x48xf32> to vector<1x48xf32>
    %c0_29 = arith.constant 0 : index
    %c0_30 = arith.constant 0 : index
    %c0_31 = arith.constant 0 : index
    %27 = vector.load %arg9[%c0_29, %c0_30, %c0_31] : memref<2x1x48xf32, #tpu.memory_space<vmem>>, vector<1x1x48xf32>
    %28 = vector.shape_cast %27 : vector<1x1x48xf32> to vector<1x48xf32>
    %c1_32 = arith.constant 1 : index
    %c0_33 = arith.constant 0 : index
    %c0_34 = arith.constant 0 : index
    %29 = vector.load %arg9[%c1_32, %c0_33, %c0_34] : memref<2x1x48xf32, #tpu.memory_space<vmem>>, vector<1x1x48xf32>
    %30 = vector.shape_cast %29 : vector<1x1x48xf32> to vector<1x48xf32>
    %cst_35 = arith.constant 0.000000e+00 : f32
    %31 = vector.broadcast %cst_35 : f32 to vector<2x16xf32>
    %cst_36 = arith.constant 0.000000e+00 : f32
    %32 = vector.broadcast %cst_36 : f32 to vector<2x16xf32>
    %33 = vector.extract_strided_slice %18 {offsets = [0, 0], sizes = [2, 48], strides = [1, 1]} : vector<16x48xf32> to vector<2x48xf32>
    %cst_37 = arith.constant dense<0.000000e+00> : vector<2x48xf32>
    %34 = tpu.matmul %31, %22, %cst_37 {dimension_numbers = #tpu.dot_dimension_numbers<[1], [0], [0], [1], [0, 0, 1, 1], [], []>} : vector<2x16xf32>, vector<16x48xf32>, vector<2x48xf32> -> vector<2x48xf32>
    %35 = vector.broadcast %28 : vector<1x48xf32> to vector<2x48xf32>
    %36 = arith.addf %34, %35 : vector<2x48xf32>
    %37 = vector.extract_strided_slice %33 {offsets = [0, 0], sizes = [2, 16], strides = [1, 1]} : vector<2x48xf32> to vector<2x16xf32>
    %38 = vector.extract_strided_slice %36 {offsets = [0, 0], sizes = [2, 16], strides = [1, 1]} : vector<2x48xf32> to vector<2x16xf32>
    %39 = arith.addf %37, %38 : vector<2x16xf32>
    %40 = arith.negf %39 : vector<2x16xf32>
    %41 = math.exp %40 : vector<2x16xf32>
    %cst_38 = arith.constant 1.000000e+00 : f32
    %42 = vector.broadcast %cst_38 : f32 to vector<2x16xf32>
    %43 = arith.addf %42, %41 : vector<2x16xf32>
    %44 = arith.divf %42, %43 : vector<2x16xf32>
    %45 = vector.extract_strided_slice %33 {offsets = [0, 16], sizes = [2, 16], strides = [1, 1]} : vector<2x48xf32> to vector<2x16xf32>
    %46 = vector.extract_strided_slice %36 {offsets = [0, 16], sizes = [2, 16], strides = [1, 1]} : vector<2x48xf32> to vector<2x16xf32>
    %47 = arith.addf %45, %46 : vector<2x16xf32>
    %48 = arith.negf %47 : vector<2x16xf32>
    %49 = math.exp %48 : vector<2x16xf32>
    %cst_39 = arith.constant 1.000000e+00 : f32
    %50 = vector.broadcast %cst_39 : f32 to vector<2x16xf32>
    %51 = arith.addf %50, %49 : vector<2x16xf32>
    %52 = arith.divf %50, %51 : vector<2x16xf32>
    %53 = vector.extract_strided_slice %33 {offsets = [0, 32], sizes = [2, 16], strides = [1, 1]} : vector<2x48xf32> to vector<2x16xf32>
    %54 = vector.extract_strided_slice %36 {offsets = [0, 32], sizes = [2, 16], strides = [1, 1]} : vector<2x48xf32> to vector<2x16xf32>
    %55 = arith.mulf %44, %54 : vector<2x16xf32>
    %56 = arith.addf %53, %55 : vector<2x16xf32>
    %57 = math.tanh %56 : vector<2x16xf32>
    %cst_40 = arith.constant 1.000000e+00 : f32
    %58 = vector.broadcast %cst_40 : f32 to vector<2x16xf32>
    %59 = arith.subf %58, %52 : vector<2x16xf32>
    %60 = arith.mulf %59, %57 : vector<2x16xf32>
    %61 = arith.mulf %52, %31 : vector<2x16xf32>
    %62 = arith.addf %60, %61 : vector<2x16xf32>
    %cst_41 = arith.constant dense<0.000000e+00> : vector<2x48xf32>
    %63 = tpu.matmul %62, %20, %cst_41 {dimension_numbers = #tpu.dot_dimension_numbers<[1], [0], [0], [1], [0, 0, 1, 1], [], []>} : vector<2x16xf32>, vector<16x48xf32>, vector<2x48xf32> -> vector<2x48xf32>
    %64 = vector.broadcast %26 : vector<1x48xf32> to vector<2x48xf32>
    %65 = arith.addf %63, %64 : vector<2x48xf32>
    %cst_42 = arith.constant dense<0.000000e+00> : vector<2x48xf32>
    %66 = tpu.matmul %32, %24, %cst_42 {dimension_numbers = #tpu.dot_dimension_numbers<[1], [0], [0], [1], [0, 0, 1, 1], [], []>} : vector<2x16xf32>, vector<16x48xf32>, vector<2x48xf32> -> vector<2x48xf32>
    %67 = vector.broadcast %30 : vector<1x48xf32> to vector<2x48xf32>
    %68 = arith.addf %66, %67 : vector<2x48xf32>
    %69 = vector.extract_strided_slice %65 {offsets = [0, 0], sizes = [2, 16], strides = [1, 1]} : vector<2x48xf32> to vector<2x16xf32>
    %70 = vector.extract_strided_slice %68 {offsets = [0, 0], sizes = [2, 16], strides = [1, 1]} : vector<2x48xf32> to vector<2x16xf32>
    %71 = arith.addf %69, %70 : vector<2x16xf32>
    %72 = arith.negf %71 : vector<2x16xf32>
    %73 = math.exp %72 : vector<2x16xf32>
    %cst_43 = arith.constant 1.000000e+00 : f32
    %74 = vector.broadcast %cst_43 : f32 to vector<2x16xf32>
    %75 = arith.addf %74, %73 : vector<2x16xf32>
    %76 = arith.divf %74, %75 : vector<2x16xf32>
    %77 = vector.extract_strided_slice %65 {offsets = [0, 16], sizes = [2, 16], strides = [1, 1]} : vector<2x48xf32> to vector<2x16xf32>
    %78 = vector.extract_strided_slice %68 {offsets = [0, 16], sizes = [2, 16], strides = [1, 1]} : vector<2x48xf32> to vector<2x16xf32>
    %79 = arith.addf %77, %78 : vector<2x16xf32>
    %80 = arith.negf %79 : vector<2x16xf32>
    %81 = math.exp %80 : vector<2x16xf32>
    %cst_44 = arith.constant 1.000000e+00 : f32
    %82 = vector.broadcast %cst_44 : f32 to vector<2x16xf32>
    %83 = arith.addf %82, %81 : vector<2x16xf32>
    %84 = arith.divf %82, %83 : vector<2x16xf32>
    %85 = vector.extract_strided_slice %65 {offsets = [0, 32], sizes = [2, 16], strides = [1, 1]} : vector<2x48xf32> to vector<2x16xf32>
    %86 = vector.extract_strided_slice %68 {offsets = [0, 32], sizes = [2, 16], strides = [1, 1]} : vector<2x48xf32> to vector<2x16xf32>
    %87 = arith.mulf %76, %86 : vector<2x16xf32>
    %88 = arith.addf %85, %87 : vector<2x16xf32>
    %89 = math.tanh %88 : vector<2x16xf32>
    %cst_45 = arith.constant 1.000000e+00 : f32
    %90 = vector.broadcast %cst_45 : f32 to vector<2x16xf32>
    %91 = arith.subf %90, %84 : vector<2x16xf32>
    %92 = arith.mulf %91, %89 : vector<2x16xf32>
    %93 = arith.mulf %84, %32 : vector<2x16xf32>
    %94 = arith.addf %92, %93 : vector<2x16xf32>
    %95 = vector.extract_strided_slice %18 {offsets = [2, 0], sizes = [2, 48], strides = [1, 1]} : vector<16x48xf32> to vector<2x48xf32>
    %cst_46 = arith.constant dense<0.000000e+00> : vector<2x48xf32>
    %96 = tpu.matmul %62, %22, %cst_46 {dimension_numbers = #tpu.dot_dimension_numbers<[1], [0], [0], [1], [0, 0, 1, 1], [], []>} : vector<2x16xf32>, vector<16x48xf32>, vector<2x48xf32> -> vector<2x48xf32>
    %97 = vector.broadcast %28 : vector<1x48xf32> to vector<2x48xf32>
    %98 = arith.addf %96, %97 : vector<2x48xf32>
    %99 = vector.extract_strided_slice %95 {offsets = [0, 0], sizes = [2, 16], strides = [1, 1]} : vector<2x48xf32> to vector<2x16xf32>
    %100 = vector.extract_strided_slice %98 {offsets = [0, 0], sizes = [2, 16], strides = [1, 1]} : vector<2x48xf32> to vector<2x16xf32>
    %101 = arith.addf %99, %100 : vector<2x16xf32>
    %102 = arith.negf %101 : vector<2x16xf32>
    %103 = math.exp %102 : vector<2x16xf32>
    %cst_47 = arith.constant 1.000000e+00 : f32
    %104 = vector.broadcast %cst_47 : f32 to vector<2x16xf32>
    %105 = arith.addf %104, %103 : vector<2x16xf32>
    %106 = arith.divf %104, %105 : vector<2x16xf32>
    %107 = vector.extract_strided_slice %95 {offsets = [0, 16], sizes = [2, 16], strides = [1, 1]} : vector<2x48xf32> to vector<2x16xf32>
    %108 = vector.extract_strided_slice %98 {offsets = [0, 16], sizes = [2, 16], strides = [1, 1]} : vector<2x48xf32> to vector<2x16xf32>
    %109 = arith.addf %107, %108 : vector<2x16xf32>
    %110 = arith.negf %109 : vector<2x16xf32>
    %111 = math.exp %110 : vector<2x16xf32>
    %cst_48 = arith.constant 1.000000e+00 : f32
    %112 = vector.broadcast %cst_48 : f32 to vector<2x16xf32>
    %113 = arith.addf %112, %111 : vector<2x16xf32>
    %114 = arith.divf %112, %113 : vector<2x16xf32>
    %115 = vector.extract_strided_slice %95 {offsets = [0, 32], sizes = [2, 16], strides = [1, 1]} : vector<2x48xf32> to vector<2x16xf32>
    %116 = vector.extract_strided_slice %98 {offsets = [0, 32], sizes = [2, 16], strides = [1, 1]} : vector<2x48xf32> to vector<2x16xf32>
    %117 = arith.mulf %106, %116 : vector<2x16xf32>
    %118 = arith.addf %115, %117 : vector<2x16xf32>
    %119 = math.tanh %118 : vector<2x16xf32>
    %cst_49 = arith.constant 1.000000e+00 : f32
    %120 = vector.broadcast %cst_49 : f32 to vector<2x16xf32>
    %121 = arith.subf %120, %114 : vector<2x16xf32>
    %122 = arith.mulf %121, %119 : vector<2x16xf32>
    %123 = arith.mulf %114, %62 : vector<2x16xf32>
    %124 = arith.addf %122, %123 : vector<2x16xf32>
    %cst_50 = arith.constant dense<0.000000e+00> : vector<2x48xf32>
    %125 = tpu.matmul %124, %20, %cst_50 {dimension_numbers = #tpu.dot_dimension_numbers<[1], [0], [0], [1], [0, 0, 1, 1], [], []>} : vector<2x16xf32>, vector<16x48xf32>, vector<2x48xf32> -> vector<2x48xf32>
    %126 = vector.broadcast %26 : vector<1x48xf32> to vector<2x48xf32>
    %127 = arith.addf %125, %126 : vector<2x48xf32>
    %cst_51 = arith.constant dense<0.000000e+00> : vector<2x48xf32>
    %128 = tpu.matmul %94, %24, %cst_51 {dimension_numbers = #tpu.dot_dimension_numbers<[1], [0], [0], [1], [0, 0, 1, 1], [], []>} : vector<2x16xf32>, vector<16x48xf32>, vector<2x48xf32> -> vector<2x48xf32>
    %129 = vector.broadcast %30 : vector<1x48xf32> to vector<2x48xf32>
    %130 = arith.addf %128, %129 : vector<2x48xf32>
    %131 = vector.extract_strided_slice %127 {offsets = [0, 0], sizes = [2, 16], strides = [1, 1]} : vector<2x48xf32> to vector<2x16xf32>
    %132 = vector.extract_strided_slice %130 {offsets = [0, 0], sizes = [2, 16], strides = [1, 1]} : vector<2x48xf32> to vector<2x16xf32>
    %133 = arith.addf %131, %132 : vector<2x16xf32>
    %134 = arith.negf %133 : vector<2x16xf32>
    %135 = math.exp %134 : vector<2x16xf32>
    %cst_52 = arith.constant 1.000000e+00 : f32
    %136 = vector.broadcast %cst_52 : f32 to vector<2x16xf32>
    %137 = arith.addf %136, %135 : vector<2x16xf32>
    %138 = arith.divf %136, %137 : vector<2x16xf32>
    %139 = vector.extract_strided_slice %127 {offsets = [0, 16], sizes = [2, 16], strides = [1, 1]} : vector<2x48xf32> to vector<2x16xf32>
    %140 = vector.extract_strided_slice %130 {offsets = [0, 16], sizes = [2, 16], strides = [1, 1]} : vector<2x48xf32> to vector<2x16xf32>
    %141 = arith.addf %139, %140 : vector<2x16xf32>
    %142 = arith.negf %141 : vector<2x16xf32>
    %143 = math.exp %142 : vector<2x16xf32>
    %cst_53 = arith.constant 1.000000e+00 : f32
    %144 = vector.broadcast %cst_53 : f32 to vector<2x16xf32>
    %145 = arith.addf %144, %143 : vector<2x16xf32>
    %146 = arith.divf %144, %145 : vector<2x16xf32>
    %147 = vector.extract_strided_slice %127 {offsets = [0, 32], sizes = [2, 16], strides = [1, 1]} : vector<2x48xf32> to vector<2x16xf32>
    %148 = vector.extract_strided_slice %130 {offsets = [0, 32], sizes = [2, 16], strides = [1, 1]} : vector<2x48xf32> to vector<2x16xf32>
    %149 = arith.mulf %138, %148 : vector<2x16xf32>
    %150 = arith.addf %147, %149 : vector<2x16xf32>
    %151 = math.tanh %150 : vector<2x16xf32>
    %cst_54 = arith.constant 1.000000e+00 : f32
    %152 = vector.broadcast %cst_54 : f32 to vector<2x16xf32>
    %153 = arith.subf %152, %146 : vector<2x16xf32>
    %154 = arith.mulf %153, %151 : vector<2x16xf32>
    %155 = arith.mulf %146, %94 : vector<2x16xf32>
    %156 = arith.addf %154, %155 : vector<2x16xf32>
    %157 = vector.extract_strided_slice %18 {offsets = [4, 0], sizes = [2, 48], strides = [1, 1]} : vector<16x48xf32> to vector<2x48xf32>
    %cst_55 = arith.constant dense<0.000000e+00> : vector<2x48xf32>
    %158 = tpu.matmul %124, %22, %cst_55 {dimension_numbers = #tpu.dot_dimension_numbers<[1], [0], [0], [1], [0, 0, 1, 1], [], []>} : vector<2x16xf32>, vector<16x48xf32>, vector<2x48xf32> -> vector<2x48xf32>
    %159 = vector.broadcast %28 : vector<1x48xf32> to vector<2x48xf32>
    %160 = arith.addf %158, %159 : vector<2x48xf32>
    %161 = vector.extract_strided_slice %157 {offsets = [0, 0], sizes = [2, 16], strides = [1, 1]} : vector<2x48xf32> to vector<2x16xf32>
    %162 = vector.extract_strided_slice %160 {offsets = [0, 0], sizes = [2, 16], strides = [1, 1]} : vector<2x48xf32> to vector<2x16xf32>
    %163 = arith.addf %161, %162 : vector<2x16xf32>
    %164 = arith.negf %163 : vector<2x16xf32>
    %165 = math.exp %164 : vector<2x16xf32>
    %cst_56 = arith.constant 1.000000e+00 : f32
    %166 = vector.broadcast %cst_56 : f32 to vector<2x16xf32>
    %167 = arith.addf %166, %165 : vector<2x16xf32>
    %168 = arith.divf %166, %167 : vector<2x16xf32>
    %169 = vector.extract_strided_slice %157 {offsets = [0, 16], sizes = [2, 16], strides = [1, 1]} : vector<2x48xf32> to vector<2x16xf32>
    %170 = vector.extract_strided_slice %160 {offsets = [0, 16], sizes = [2, 16], strides = [1, 1]} : vector<2x48xf32> to vector<2x16xf32>
    %171 = arith.addf %169, %170 : vector<2x16xf32>
    %172 = arith.negf %171 : vector<2x16xf32>
    %173 = math.exp %172 : vector<2x16xf32>
    %cst_57 = arith.constant 1.000000e+00 : f32
    %174 = vector.broadcast %cst_57 : f32 to vector<2x16xf32>
    %175 = arith.addf %174, %173 : vector<2x16xf32>
    %176 = arith.divf %174, %175 : vector<2x16xf32>
    %177 = vector.extract_strided_slice %157 {offsets = [0, 32], sizes = [2, 16], strides = [1, 1]} : vector<2x48xf32> to vector<2x16xf32>
    %178 = vector.extract_strided_slice %160 {offsets = [0, 32], sizes = [2, 16], strides = [1, 1]} : vector<2x48xf32> to vector<2x16xf32>
    %179 = arith.mulf %168, %178 : vector<2x16xf32>
    %180 = arith.addf %177, %179 : vector<2x16xf32>
    %181 = math.tanh %180 : vector<2x16xf32>
    %cst_58 = arith.constant 1.000000e+00 : f32
    %182 = vector.broadcast %cst_58 : f32 to vector<2x16xf32>
    %183 = arith.subf %182, %176 : vector<2x16xf32>
    %184 = arith.mulf %183, %181 : vector<2x16xf32>
    %185 = arith.mulf %176, %124 : vector<2x16xf32>
    %186 = arith.addf %184, %185 : vector<2x16xf32>
    %cst_59 = arith.constant dense<0.000000e+00> : vector<2x48xf32>
    %187 = tpu.matmul %186, %20, %cst_59 {dimension_numbers = #tpu.dot_dimension_numbers<[1], [0], [0], [1], [0, 0, 1, 1], [], []>} : vector<2x16xf32>, vector<16x48xf32>, vector<2x48xf32> -> vector<2x48xf32>
    %188 = vector.broadcast %26 : vector<1x48xf32> to vector<2x48xf32>
    %189 = arith.addf %187, %188 : vector<2x48xf32>
    %cst_60 = arith.constant dense<0.000000e+00> : vector<2x48xf32>
    %190 = tpu.matmul %156, %24, %cst_60 {dimension_numbers = #tpu.dot_dimension_numbers<[1], [0], [0], [1], [0, 0, 1, 1], [], []>} : vector<2x16xf32>, vector<16x48xf32>, vector<2x48xf32> -> vector<2x48xf32>
    %191 = vector.broadcast %30 : vector<1x48xf32> to vector<2x48xf32>
    %192 = arith.addf %190, %191 : vector<2x48xf32>
    %193 = vector.extract_strided_slice %189 {offsets = [0, 0], sizes = [2, 16], strides = [1, 1]} : vector<2x48xf32> to vector<2x16xf32>
    %194 = vector.extract_strided_slice %192 {offsets = [0, 0], sizes = [2, 16], strides = [1, 1]} : vector<2x48xf32> to vector<2x16xf32>
    %195 = arith.addf %193, %194 : vector<2x16xf32>
    %196 = arith.negf %195 : vector<2x16xf32>
    %197 = math.exp %196 : vector<2x16xf32>
    %cst_61 = arith.constant 1.000000e+00 : f32
    %198 = vector.broadcast %cst_61 : f32 to vector<2x16xf32>
    %199 = arith.addf %198, %197 : vector<2x16xf32>
    %200 = arith.divf %198, %199 : vector<2x16xf32>
    %201 = vector.extract_strided_slice %189 {offsets = [0, 16], sizes = [2, 16], strides = [1, 1]} : vector<2x48xf32> to vector<2x16xf32>
    %202 = vector.extract_strided_slice %192 {offsets = [0, 16], sizes = [2, 16], strides = [1, 1]} : vector<2x48xf32> to vector<2x16xf32>
    %203 = arith.addf %201, %202 : vector<2x16xf32>
    %204 = arith.negf %203 : vector<2x16xf32>
    %205 = math.exp %204 : vector<2x16xf32>
    %cst_62 = arith.constant 1.000000e+00 : f32
    %206 = vector.broadcast %cst_62 : f32 to vector<2x16xf32>
    %207 = arith.addf %206, %205 : vector<2x16xf32>
    %208 = arith.divf %206, %207 : vector<2x16xf32>
    %209 = vector.extract_strided_slice %189 {offsets = [0, 32], sizes = [2, 16], strides = [1, 1]} : vector<2x48xf32> to vector<2x16xf32>
    %210 = vector.extract_strided_slice %192 {offsets = [0, 32], sizes = [2, 16], strides = [1, 1]} : vector<2x48xf32> to vector<2x16xf32>
    %211 = arith.mulf %200, %210 : vector<2x16xf32>
    %212 = arith.addf %209, %211 : vector<2x16xf32>
    %213 = math.tanh %212 : vector<2x16xf32>
    %cst_63 = arith.constant 1.000000e+00 : f32
    %214 = vector.broadcast %cst_63 : f32 to vector<2x16xf32>
    %215 = arith.subf %214, %208 : vector<2x16xf32>
    %216 = arith.mulf %215, %213 : vector<2x16xf32>
    %217 = arith.mulf %208, %156 : vector<2x16xf32>
    %218 = arith.addf %216, %217 : vector<2x16xf32>
    %219 = vector.extract_strided_slice %18 {offsets = [6, 0], sizes = [2, 48], strides = [1, 1]} : vector<16x48xf32> to vector<2x48xf32>
    %cst_64 = arith.constant dense<0.000000e+00> : vector<2x48xf32>
    %220 = tpu.matmul %186, %22, %cst_64 {dimension_numbers = #tpu.dot_dimension_numbers<[1], [0], [0], [1], [0, 0, 1, 1], [], []>} : vector<2x16xf32>, vector<16x48xf32>, vector<2x48xf32> -> vector<2x48xf32>
    %221 = vector.broadcast %28 : vector<1x48xf32> to vector<2x48xf32>
    %222 = arith.addf %220, %221 : vector<2x48xf32>
    %223 = vector.extract_strided_slice %219 {offsets = [0, 0], sizes = [2, 16], strides = [1, 1]} : vector<2x48xf32> to vector<2x16xf32>
    %224 = vector.extract_strided_slice %222 {offsets = [0, 0], sizes = [2, 16], strides = [1, 1]} : vector<2x48xf32> to vector<2x16xf32>
    %225 = arith.addf %223, %224 : vector<2x16xf32>
    %226 = arith.negf %225 : vector<2x16xf32>
    %227 = math.exp %226 : vector<2x16xf32>
    %cst_65 = arith.constant 1.000000e+00 : f32
    %228 = vector.broadcast %cst_65 : f32 to vector<2x16xf32>
    %229 = arith.addf %228, %227 : vector<2x16xf32>
    %230 = arith.divf %228, %229 : vector<2x16xf32>
    %231 = vector.extract_strided_slice %219 {offsets = [0, 16], sizes = [2, 16], strides = [1, 1]} : vector<2x48xf32> to vector<2x16xf32>
    %232 = vector.extract_strided_slice %222 {offsets = [0, 16], sizes = [2, 16], strides = [1, 1]} : vector<2x48xf32> to vector<2x16xf32>
    %233 = arith.addf %231, %232 : vector<2x16xf32>
    %234 = arith.negf %233 : vector<2x16xf32>
    %235 = math.exp %234 : vector<2x16xf32>
    %cst_66 = arith.constant 1.000000e+00 : f32
    %236 = vector.broadcast %cst_66 : f32 to vector<2x16xf32>
    %237 = arith.addf %236, %235 : vector<2x16xf32>
    %238 = arith.divf %236, %237 : vector<2x16xf32>
    %239 = vector.extract_strided_slice %219 {offsets = [0, 32], sizes = [2, 16], strides = [1, 1]} : vector<2x48xf32> to vector<2x16xf32>
    %240 = vector.extract_strided_slice %222 {offsets = [0, 32], sizes = [2, 16], strides = [1, 1]} : vector<2x48xf32> to vector<2x16xf32>
    %241 = arith.mulf %230, %240 : vector<2x16xf32>
    %242 = arith.addf %239, %241 : vector<2x16xf32>
    %243 = math.tanh %242 : vector<2x16xf32>
    %cst_67 = arith.constant 1.000000e+00 : f32
    %244 = vector.broadcast %cst_67 : f32 to vector<2x16xf32>
    %245 = arith.subf %244, %238 : vector<2x16xf32>
    %246 = arith.mulf %245, %243 : vector<2x16xf32>
    %247 = arith.mulf %238, %186 : vector<2x16xf32>
    %248 = arith.addf %246, %247 : vector<2x16xf32>
    %cst_68 = arith.constant dense<0.000000e+00> : vector<2x48xf32>
    %249 = tpu.matmul %248, %20, %cst_68 {dimension_numbers = #tpu.dot_dimension_numbers<[1], [0], [0], [1], [0, 0, 1, 1], [], []>} : vector<2x16xf32>, vector<16x48xf32>, vector<2x48xf32> -> vector<2x48xf32>
    %250 = vector.broadcast %26 : vector<1x48xf32> to vector<2x48xf32>
    %251 = arith.addf %249, %250 : vector<2x48xf32>
    %cst_69 = arith.constant dense<0.000000e+00> : vector<2x48xf32>
    %252 = tpu.matmul %218, %24, %cst_69 {dimension_numbers = #tpu.dot_dimension_numbers<[1], [0], [0], [1], [0, 0, 1, 1], [], []>} : vector<2x16xf32>, vector<16x48xf32>, vector<2x48xf32> -> vector<2x48xf32>
    %253 = vector.broadcast %30 : vector<1x48xf32> to vector<2x48xf32>
    %254 = arith.addf %252, %253 : vector<2x48xf32>
    %255 = vector.extract_strided_slice %251 {offsets = [0, 0], sizes = [2, 16], strides = [1, 1]} : vector<2x48xf32> to vector<2x16xf32>
    %256 = vector.extract_strided_slice %254 {offsets = [0, 0], sizes = [2, 16], strides = [1, 1]} : vector<2x48xf32> to vector<2x16xf32>
    %257 = arith.addf %255, %256 : vector<2x16xf32>
    %258 = arith.negf %257 : vector<2x16xf32>
    %259 = math.exp %258 : vector<2x16xf32>
    %cst_70 = arith.constant 1.000000e+00 : f32
    %260 = vector.broadcast %cst_70 : f32 to vector<2x16xf32>
    %261 = arith.addf %260, %259 : vector<2x16xf32>
    %262 = arith.divf %260, %261 : vector<2x16xf32>
    %263 = vector.extract_strided_slice %251 {offsets = [0, 16], sizes = [2, 16], strides = [1, 1]} : vector<2x48xf32> to vector<2x16xf32>
    %264 = vector.extract_strided_slice %254 {offsets = [0, 16], sizes = [2, 16], strides = [1, 1]} : vector<2x48xf32> to vector<2x16xf32>
    %265 = arith.addf %263, %264 : vector<2x16xf32>
    %266 = arith.negf %265 : vector<2x16xf32>
    %267 = math.exp %266 : vector<2x16xf32>
    %cst_71 = arith.constant 1.000000e+00 : f32
    %268 = vector.broadcast %cst_71 : f32 to vector<2x16xf32>
    %269 = arith.addf %268, %267 : vector<2x16xf32>
    %270 = arith.divf %268, %269 : vector<2x16xf32>
    %271 = vector.extract_strided_slice %251 {offsets = [0, 32], sizes = [2, 16], strides = [1, 1]} : vector<2x48xf32> to vector<2x16xf32>
    %272 = vector.extract_strided_slice %254 {offsets = [0, 32], sizes = [2, 16], strides = [1, 1]} : vector<2x48xf32> to vector<2x16xf32>
    %273 = arith.mulf %262, %272 : vector<2x16xf32>
    %274 = arith.addf %271, %273 : vector<2x16xf32>
    %275 = math.tanh %274 : vector<2x16xf32>
    %cst_72 = arith.constant 1.000000e+00 : f32
    %276 = vector.broadcast %cst_72 : f32 to vector<2x16xf32>
    %277 = arith.subf %276, %270 : vector<2x16xf32>
    %278 = arith.mulf %277, %275 : vector<2x16xf32>
    %279 = arith.mulf %270, %218 : vector<2x16xf32>
    %280 = arith.addf %278, %279 : vector<2x16xf32>
    %281 = vector.extract_strided_slice %18 {offsets = [8, 0], sizes = [2, 48], strides = [1, 1]} : vector<16x48xf32> to vector<2x48xf32>
    %cst_73 = arith.constant dense<0.000000e+00> : vector<2x48xf32>
    %282 = tpu.matmul %248, %22, %cst_73 {dimension_numbers = #tpu.dot_dimension_numbers<[1], [0], [0], [1], [0, 0, 1, 1], [], []>} : vector<2x16xf32>, vector<16x48xf32>, vector<2x48xf32> -> vector<2x48xf32>
    %283 = vector.broadcast %28 : vector<1x48xf32> to vector<2x48xf32>
    %284 = arith.addf %282, %283 : vector<2x48xf32>
    %285 = vector.extract_strided_slice %281 {offsets = [0, 0], sizes = [2, 16], strides = [1, 1]} : vector<2x48xf32> to vector<2x16xf32>
    %286 = vector.extract_strided_slice %284 {offsets = [0, 0], sizes = [2, 16], strides = [1, 1]} : vector<2x48xf32> to vector<2x16xf32>
    %287 = arith.addf %285, %286 : vector<2x16xf32>
    %288 = arith.negf %287 : vector<2x16xf32>
    %289 = math.exp %288 : vector<2x16xf32>
    %cst_74 = arith.constant 1.000000e+00 : f32
    %290 = vector.broadcast %cst_74 : f32 to vector<2x16xf32>
    %291 = arith.addf %290, %289 : vector<2x16xf32>
    %292 = arith.divf %290, %291 : vector<2x16xf32>
    %293 = vector.extract_strided_slice %281 {offsets = [0, 16], sizes = [2, 16], strides = [1, 1]} : vector<2x48xf32> to vector<2x16xf32>
    %294 = vector.extract_strided_slice %284 {offsets = [0, 16], sizes = [2, 16], strides = [1, 1]} : vector<2x48xf32> to vector<2x16xf32>
    %295 = arith.addf %293, %294 : vector<2x16xf32>
    %296 = arith.negf %295 : vector<2x16xf32>
    %297 = math.exp %296 : vector<2x16xf32>
    %cst_75 = arith.constant 1.000000e+00 : f32
    %298 = vector.broadcast %cst_75 : f32 to vector<2x16xf32>
    %299 = arith.addf %298, %297 : vector<2x16xf32>
    %300 = arith.divf %298, %299 : vector<2x16xf32>
    %301 = vector.extract_strided_slice %281 {offsets = [0, 32], sizes = [2, 16], strides = [1, 1]} : vector<2x48xf32> to vector<2x16xf32>
    %302 = vector.extract_strided_slice %284 {offsets = [0, 32], sizes = [2, 16], strides = [1, 1]} : vector<2x48xf32> to vector<2x16xf32>
    %303 = arith.mulf %292, %302 : vector<2x16xf32>
    %304 = arith.addf %301, %303 : vector<2x16xf32>
    %305 = math.tanh %304 : vector<2x16xf32>
    %cst_76 = arith.constant 1.000000e+00 : f32
    %306 = vector.broadcast %cst_76 : f32 to vector<2x16xf32>
    %307 = arith.subf %306, %300 : vector<2x16xf32>
    %308 = arith.mulf %307, %305 : vector<2x16xf32>
    %309 = arith.mulf %300, %248 : vector<2x16xf32>
    %310 = arith.addf %308, %309 : vector<2x16xf32>
    %cst_77 = arith.constant dense<0.000000e+00> : vector<2x48xf32>
    %311 = tpu.matmul %310, %20, %cst_77 {dimension_numbers = #tpu.dot_dimension_numbers<[1], [0], [0], [1], [0, 0, 1, 1], [], []>} : vector<2x16xf32>, vector<16x48xf32>, vector<2x48xf32> -> vector<2x48xf32>
    %312 = vector.broadcast %26 : vector<1x48xf32> to vector<2x48xf32>
    %313 = arith.addf %311, %312 : vector<2x48xf32>
    %cst_78 = arith.constant dense<0.000000e+00> : vector<2x48xf32>
    %314 = tpu.matmul %280, %24, %cst_78 {dimension_numbers = #tpu.dot_dimension_numbers<[1], [0], [0], [1], [0, 0, 1, 1], [], []>} : vector<2x16xf32>, vector<16x48xf32>, vector<2x48xf32> -> vector<2x48xf32>
    %315 = vector.broadcast %30 : vector<1x48xf32> to vector<2x48xf32>
    %316 = arith.addf %314, %315 : vector<2x48xf32>
    %317 = vector.extract_strided_slice %313 {offsets = [0, 0], sizes = [2, 16], strides = [1, 1]} : vector<2x48xf32> to vector<2x16xf32>
    %318 = vector.extract_strided_slice %316 {offsets = [0, 0], sizes = [2, 16], strides = [1, 1]} : vector<2x48xf32> to vector<2x16xf32>
    %319 = arith.addf %317, %318 : vector<2x16xf32>
    %320 = arith.negf %319 : vector<2x16xf32>
    %321 = math.exp %320 : vector<2x16xf32>
    %cst_79 = arith.constant 1.000000e+00 : f32
    %322 = vector.broadcast %cst_79 : f32 to vector<2x16xf32>
    %323 = arith.addf %322, %321 : vector<2x16xf32>
    %324 = arith.divf %322, %323 : vector<2x16xf32>
    %325 = vector.extract_strided_slice %313 {offsets = [0, 16], sizes = [2, 16], strides = [1, 1]} : vector<2x48xf32> to vector<2x16xf32>
    %326 = vector.extract_strided_slice %316 {offsets = [0, 16], sizes = [2, 16], strides = [1, 1]} : vector<2x48xf32> to vector<2x16xf32>
    %327 = arith.addf %325, %326 : vector<2x16xf32>
    %328 = arith.negf %327 : vector<2x16xf32>
    %329 = math.exp %328 : vector<2x16xf32>
    %cst_80 = arith.constant 1.000000e+00 : f32
    %330 = vector.broadcast %cst_80 : f32 to vector<2x16xf32>
    %331 = arith.addf %330, %329 : vector<2x16xf32>
    %332 = arith.divf %330, %331 : vector<2x16xf32>
    %333 = vector.extract_strided_slice %313 {offsets = [0, 32], sizes = [2, 16], strides = [1, 1]} : vector<2x48xf32> to vector<2x16xf32>
    %334 = vector.extract_strided_slice %316 {offsets = [0, 32], sizes = [2, 16], strides = [1, 1]} : vector<2x48xf32> to vector<2x16xf32>
    %335 = arith.mulf %324, %334 : vector<2x16xf32>
    %336 = arith.addf %333, %335 : vector<2x16xf32>
    %337 = math.tanh %336 : vector<2x16xf32>
    %cst_81 = arith.constant 1.000000e+00 : f32
    %338 = vector.broadcast %cst_81 : f32 to vector<2x16xf32>
    %339 = arith.subf %338, %332 : vector<2x16xf32>
    %340 = arith.mulf %339, %337 : vector<2x16xf32>
    %341 = arith.mulf %332, %280 : vector<2x16xf32>
    %342 = arith.addf %340, %341 : vector<2x16xf32>
    %343 = vector.extract_strided_slice %18 {offsets = [10, 0], sizes = [2, 48], strides = [1, 1]} : vector<16x48xf32> to vector<2x48xf32>
    %cst_82 = arith.constant dense<0.000000e+00> : vector<2x48xf32>
    %344 = tpu.matmul %310, %22, %cst_82 {dimension_numbers = #tpu.dot_dimension_numbers<[1], [0], [0], [1], [0, 0, 1, 1], [], []>} : vector<2x16xf32>, vector<16x48xf32>, vector<2x48xf32> -> vector<2x48xf32>
    %345 = vector.broadcast %28 : vector<1x48xf32> to vector<2x48xf32>
    %346 = arith.addf %344, %345 : vector<2x48xf32>
    %347 = vector.extract_strided_slice %343 {offsets = [0, 0], sizes = [2, 16], strides = [1, 1]} : vector<2x48xf32> to vector<2x16xf32>
    %348 = vector.extract_strided_slice %346 {offsets = [0, 0], sizes = [2, 16], strides = [1, 1]} : vector<2x48xf32> to vector<2x16xf32>
    %349 = arith.addf %347, %348 : vector<2x16xf32>
    %350 = arith.negf %349 : vector<2x16xf32>
    %351 = math.exp %350 : vector<2x16xf32>
    %cst_83 = arith.constant 1.000000e+00 : f32
    %352 = vector.broadcast %cst_83 : f32 to vector<2x16xf32>
    %353 = arith.addf %352, %351 : vector<2x16xf32>
    %354 = arith.divf %352, %353 : vector<2x16xf32>
    %355 = vector.extract_strided_slice %343 {offsets = [0, 16], sizes = [2, 16], strides = [1, 1]} : vector<2x48xf32> to vector<2x16xf32>
    %356 = vector.extract_strided_slice %346 {offsets = [0, 16], sizes = [2, 16], strides = [1, 1]} : vector<2x48xf32> to vector<2x16xf32>
    %357 = arith.addf %355, %356 : vector<2x16xf32>
    %358 = arith.negf %357 : vector<2x16xf32>
    %359 = math.exp %358 : vector<2x16xf32>
    %cst_84 = arith.constant 1.000000e+00 : f32
    %360 = vector.broadcast %cst_84 : f32 to vector<2x16xf32>
    %361 = arith.addf %360, %359 : vector<2x16xf32>
    %362 = arith.divf %360, %361 : vector<2x16xf32>
    %363 = vector.extract_strided_slice %343 {offsets = [0, 32], sizes = [2, 16], strides = [1, 1]} : vector<2x48xf32> to vector<2x16xf32>
    %364 = vector.extract_strided_slice %346 {offsets = [0, 32], sizes = [2, 16], strides = [1, 1]} : vector<2x48xf32> to vector<2x16xf32>
    %365 = arith.mulf %354, %364 : vector<2x16xf32>
    %366 = arith.addf %363, %365 : vector<2x16xf32>
    %367 = math.tanh %366 : vector<2x16xf32>
    %cst_85 = arith.constant 1.000000e+00 : f32
    %368 = vector.broadcast %cst_85 : f32 to vector<2x16xf32>
    %369 = arith.subf %368, %362 : vector<2x16xf32>
    %370 = arith.mulf %369, %367 : vector<2x16xf32>
    %371 = arith.mulf %362, %310 : vector<2x16xf32>
    %372 = arith.addf %370, %371 : vector<2x16xf32>
    %cst_86 = arith.constant dense<0.000000e+00> : vector<2x48xf32>
    %373 = tpu.matmul %372, %20, %cst_86 {dimension_numbers = #tpu.dot_dimension_numbers<[1], [0], [0], [1], [0, 0, 1, 1], [], []>} : vector<2x16xf32>, vector<16x48xf32>, vector<2x48xf32> -> vector<2x48xf32>
    %374 = vector.broadcast %26 : vector<1x48xf32> to vector<2x48xf32>
    %375 = arith.addf %373, %374 : vector<2x48xf32>
    %cst_87 = arith.constant dense<0.000000e+00> : vector<2x48xf32>
    %376 = tpu.matmul %342, %24, %cst_87 {dimension_numbers = #tpu.dot_dimension_numbers<[1], [0], [0], [1], [0, 0, 1, 1], [], []>} : vector<2x16xf32>, vector<16x48xf32>, vector<2x48xf32> -> vector<2x48xf32>
    %377 = vector.broadcast %30 : vector<1x48xf32> to vector<2x48xf32>
    %378 = arith.addf %376, %377 : vector<2x48xf32>
    %379 = vector.extract_strided_slice %375 {offsets = [0, 0], sizes = [2, 16], strides = [1, 1]} : vector<2x48xf32> to vector<2x16xf32>
    %380 = vector.extract_strided_slice %378 {offsets = [0, 0], sizes = [2, 16], strides = [1, 1]} : vector<2x48xf32> to vector<2x16xf32>
    %381 = arith.addf %379, %380 : vector<2x16xf32>
    %382 = arith.negf %381 : vector<2x16xf32>
    %383 = math.exp %382 : vector<2x16xf32>
    %cst_88 = arith.constant 1.000000e+00 : f32
    %384 = vector.broadcast %cst_88 : f32 to vector<2x16xf32>
    %385 = arith.addf %384, %383 : vector<2x16xf32>
    %386 = arith.divf %384, %385 : vector<2x16xf32>
    %387 = vector.extract_strided_slice %375 {offsets = [0, 16], sizes = [2, 16], strides = [1, 1]} : vector<2x48xf32> to vector<2x16xf32>
    %388 = vector.extract_strided_slice %378 {offsets = [0, 16], sizes = [2, 16], strides = [1, 1]} : vector<2x48xf32> to vector<2x16xf32>
    %389 = arith.addf %387, %388 : vector<2x16xf32>
    %390 = arith.negf %389 : vector<2x16xf32>
    %391 = math.exp %390 : vector<2x16xf32>
    %cst_89 = arith.constant 1.000000e+00 : f32
    %392 = vector.broadcast %cst_89 : f32 to vector<2x16xf32>
    %393 = arith.addf %392, %391 : vector<2x16xf32>
    %394 = arith.divf %392, %393 : vector<2x16xf32>
    %395 = vector.extract_strided_slice %375 {offsets = [0, 32], sizes = [2, 16], strides = [1, 1]} : vector<2x48xf32> to vector<2x16xf32>
    %396 = vector.extract_strided_slice %378 {offsets = [0, 32], sizes = [2, 16], strides = [1, 1]} : vector<2x48xf32> to vector<2x16xf32>
    %397 = arith.mulf %386, %396 : vector<2x16xf32>
    %398 = arith.addf %395, %397 : vector<2x16xf32>
    %399 = math.tanh %398 : vector<2x16xf32>
    %cst_90 = arith.constant 1.000000e+00 : f32
    %400 = vector.broadcast %cst_90 : f32 to vector<2x16xf32>
    %401 = arith.subf %400, %394 : vector<2x16xf32>
    %402 = arith.mulf %401, %399 : vector<2x16xf32>
    %403 = arith.mulf %394, %342 : vector<2x16xf32>
    %404 = arith.addf %402, %403 : vector<2x16xf32>
    %405 = vector.extract_strided_slice %18 {offsets = [12, 0], sizes = [2, 48], strides = [1, 1]} : vector<16x48xf32> to vector<2x48xf32>
    %cst_91 = arith.constant dense<0.000000e+00> : vector<2x48xf32>
    %406 = tpu.matmul %372, %22, %cst_91 {dimension_numbers = #tpu.dot_dimension_numbers<[1], [0], [0], [1], [0, 0, 1, 1], [], []>} : vector<2x16xf32>, vector<16x48xf32>, vector<2x48xf32> -> vector<2x48xf32>
    %407 = vector.broadcast %28 : vector<1x48xf32> to vector<2x48xf32>
    %408 = arith.addf %406, %407 : vector<2x48xf32>
    %409 = vector.extract_strided_slice %405 {offsets = [0, 0], sizes = [2, 16], strides = [1, 1]} : vector<2x48xf32> to vector<2x16xf32>
    %410 = vector.extract_strided_slice %408 {offsets = [0, 0], sizes = [2, 16], strides = [1, 1]} : vector<2x48xf32> to vector<2x16xf32>
    %411 = arith.addf %409, %410 : vector<2x16xf32>
    %412 = arith.negf %411 : vector<2x16xf32>
    %413 = math.exp %412 : vector<2x16xf32>
    %cst_92 = arith.constant 1.000000e+00 : f32
    %414 = vector.broadcast %cst_92 : f32 to vector<2x16xf32>
    %415 = arith.addf %414, %413 : vector<2x16xf32>
    %416 = arith.divf %414, %415 : vector<2x16xf32>
    %417 = vector.extract_strided_slice %405 {offsets = [0, 16], sizes = [2, 16], strides = [1, 1]} : vector<2x48xf32> to vector<2x16xf32>
    %418 = vector.extract_strided_slice %408 {offsets = [0, 16], sizes = [2, 16], strides = [1, 1]} : vector<2x48xf32> to vector<2x16xf32>
    %419 = arith.addf %417, %418 : vector<2x16xf32>
    %420 = arith.negf %419 : vector<2x16xf32>
    %421 = math.exp %420 : vector<2x16xf32>
    %cst_93 = arith.constant 1.000000e+00 : f32
    %422 = vector.broadcast %cst_93 : f32 to vector<2x16xf32>
    %423 = arith.addf %422, %421 : vector<2x16xf32>
    %424 = arith.divf %422, %423 : vector<2x16xf32>
    %425 = vector.extract_strided_slice %405 {offsets = [0, 32], sizes = [2, 16], strides = [1, 1]} : vector<2x48xf32> to vector<2x16xf32>
    %426 = vector.extract_strided_slice %408 {offsets = [0, 32], sizes = [2, 16], strides = [1, 1]} : vector<2x48xf32> to vector<2x16xf32>
    %427 = arith.mulf %416, %426 : vector<2x16xf32>
    %428 = arith.addf %425, %427 : vector<2x16xf32>
    %429 = math.tanh %428 : vector<2x16xf32>
    %cst_94 = arith.constant 1.000000e+00 : f32
    %430 = vector.broadcast %cst_94 : f32 to vector<2x16xf32>
    %431 = arith.subf %430, %424 : vector<2x16xf32>
    %432 = arith.mulf %431, %429 : vector<2x16xf32>
    %433 = arith.mulf %424, %372 : vector<2x16xf32>
    %434 = arith.addf %432, %433 : vector<2x16xf32>
    %cst_95 = arith.constant dense<0.000000e+00> : vector<2x48xf32>
    %435 = tpu.matmul %434, %20, %cst_95 {dimension_numbers = #tpu.dot_dimension_numbers<[1], [0], [0], [1], [0, 0, 1, 1], [], []>} : vector<2x16xf32>, vector<16x48xf32>, vector<2x48xf32> -> vector<2x48xf32>
    %436 = vector.broadcast %26 : vector<1x48xf32> to vector<2x48xf32>
    %437 = arith.addf %435, %436 : vector<2x48xf32>
    %cst_96 = arith.constant dense<0.000000e+00> : vector<2x48xf32>
    %438 = tpu.matmul %404, %24, %cst_96 {dimension_numbers = #tpu.dot_dimension_numbers<[1], [0], [0], [1], [0, 0, 1, 1], [], []>} : vector<2x16xf32>, vector<16x48xf32>, vector<2x48xf32> -> vector<2x48xf32>
    %439 = vector.broadcast %30 : vector<1x48xf32> to vector<2x48xf32>
    %440 = arith.addf %438, %439 : vector<2x48xf32>
    %441 = vector.extract_strided_slice %437 {offsets = [0, 0], sizes = [2, 16], strides = [1, 1]} : vector<2x48xf32> to vector<2x16xf32>
    %442 = vector.extract_strided_slice %440 {offsets = [0, 0], sizes = [2, 16], strides = [1, 1]} : vector<2x48xf32> to vector<2x16xf32>
    %443 = arith.addf %441, %442 : vector<2x16xf32>
    %444 = arith.negf %443 : vector<2x16xf32>
    %445 = math.exp %444 : vector<2x16xf32>
    %cst_97 = arith.constant 1.000000e+00 : f32
    %446 = vector.broadcast %cst_97 : f32 to vector<2x16xf32>
    %447 = arith.addf %446, %445 : vector<2x16xf32>
    %448 = arith.divf %446, %447 : vector<2x16xf32>
    %449 = vector.extract_strided_slice %437 {offsets = [0, 16], sizes = [2, 16], strides = [1, 1]} : vector<2x48xf32> to vector<2x16xf32>
    %450 = vector.extract_strided_slice %440 {offsets = [0, 16], sizes = [2, 16], strides = [1, 1]} : vector<2x48xf32> to vector<2x16xf32>
    %451 = arith.addf %449, %450 : vector<2x16xf32>
    %452 = arith.negf %451 : vector<2x16xf32>
    %453 = math.exp %452 : vector<2x16xf32>
    %cst_98 = arith.constant 1.000000e+00 : f32
    %454 = vector.broadcast %cst_98 : f32 to vector<2x16xf32>
    %455 = arith.addf %454, %453 : vector<2x16xf32>
    %456 = arith.divf %454, %455 : vector<2x16xf32>
    %457 = vector.extract_strided_slice %437 {offsets = [0, 32], sizes = [2, 16], strides = [1, 1]} : vector<2x48xf32> to vector<2x16xf32>
    %458 = vector.extract_strided_slice %440 {offsets = [0, 32], sizes = [2, 16], strides = [1, 1]} : vector<2x48xf32> to vector<2x16xf32>
    %459 = arith.mulf %448, %458 : vector<2x16xf32>
    %460 = arith.addf %457, %459 : vector<2x16xf32>
    %461 = math.tanh %460 : vector<2x16xf32>
    %cst_99 = arith.constant 1.000000e+00 : f32
    %462 = vector.broadcast %cst_99 : f32 to vector<2x16xf32>
    %463 = arith.subf %462, %456 : vector<2x16xf32>
    %464 = arith.mulf %463, %461 : vector<2x16xf32>
    %465 = arith.mulf %456, %404 : vector<2x16xf32>
    %466 = arith.addf %464, %465 : vector<2x16xf32>
    %467 = vector.extract_strided_slice %18 {offsets = [14, 0], sizes = [2, 48], strides = [1, 1]} : vector<16x48xf32> to vector<2x48xf32>
    %cst_100 = arith.constant dense<0.000000e+00> : vector<2x48xf32>
    %468 = tpu.matmul %434, %22, %cst_100 {dimension_numbers = #tpu.dot_dimension_numbers<[1], [0], [0], [1], [0, 0, 1, 1], [], []>} : vector<2x16xf32>, vector<16x48xf32>, vector<2x48xf32> -> vector<2x48xf32>
    %469 = vector.broadcast %28 : vector<1x48xf32> to vector<2x48xf32>
    %470 = arith.addf %468, %469 : vector<2x48xf32>
    %471 = vector.extract_strided_slice %467 {offsets = [0, 0], sizes = [2, 16], strides = [1, 1]} : vector<2x48xf32> to vector<2x16xf32>
    %472 = vector.extract_strided_slice %470 {offsets = [0, 0], sizes = [2, 16], strides = [1, 1]} : vector<2x48xf32> to vector<2x16xf32>
    %473 = arith.addf %471, %472 : vector<2x16xf32>
    %474 = arith.negf %473 : vector<2x16xf32>
    %475 = math.exp %474 : vector<2x16xf32>
    %cst_101 = arith.constant 1.000000e+00 : f32
    %476 = vector.broadcast %cst_101 : f32 to vector<2x16xf32>
    %477 = arith.addf %476, %475 : vector<2x16xf32>
    %478 = arith.divf %476, %477 : vector<2x16xf32>
    %479 = vector.extract_strided_slice %467 {offsets = [0, 16], sizes = [2, 16], strides = [1, 1]} : vector<2x48xf32> to vector<2x16xf32>
    %480 = vector.extract_strided_slice %470 {offsets = [0, 16], sizes = [2, 16], strides = [1, 1]} : vector<2x48xf32> to vector<2x16xf32>
    %481 = arith.addf %479, %480 : vector<2x16xf32>
    %482 = arith.negf %481 : vector<2x16xf32>
    %483 = math.exp %482 : vector<2x16xf32>
    %cst_102 = arith.constant 1.000000e+00 : f32
    %484 = vector.broadcast %cst_102 : f32 to vector<2x16xf32>
    %485 = arith.addf %484, %483 : vector<2x16xf32>
    %486 = arith.divf %484, %485 : vector<2x16xf32>
    %487 = vector.extract_strided_slice %467 {offsets = [0, 32], sizes = [2, 16], strides = [1, 1]} : vector<2x48xf32> to vector<2x16xf32>
    %488 = vector.extract_strided_slice %470 {offsets = [0, 32], sizes = [2, 16], strides = [1, 1]} : vector<2x48xf32> to vector<2x16xf32>
    %489 = arith.mulf %478, %488 : vector<2x16xf32>
    %490 = arith.addf %487, %489 : vector<2x16xf32>
    %491 = math.tanh %490 : vector<2x16xf32>
    %cst_103 = arith.constant 1.000000e+00 : f32
    %492 = vector.broadcast %cst_103 : f32 to vector<2x16xf32>
    %493 = arith.subf %492, %486 : vector<2x16xf32>
    %494 = arith.mulf %493, %491 : vector<2x16xf32>
    %495 = arith.mulf %486, %434 : vector<2x16xf32>
    %496 = arith.addf %494, %495 : vector<2x16xf32>
    %cst_104 = arith.constant dense<0.000000e+00> : vector<2x48xf32>
    %497 = tpu.matmul %496, %20, %cst_104 {dimension_numbers = #tpu.dot_dimension_numbers<[1], [0], [0], [1], [0, 0, 1, 1], [], []>} : vector<2x16xf32>, vector<16x48xf32>, vector<2x48xf32> -> vector<2x48xf32>
    %498 = vector.broadcast %26 : vector<1x48xf32> to vector<2x48xf32>
    %499 = arith.addf %497, %498 : vector<2x48xf32>
    %cst_105 = arith.constant dense<0.000000e+00> : vector<2x48xf32>
    %500 = tpu.matmul %466, %24, %cst_105 {dimension_numbers = #tpu.dot_dimension_numbers<[1], [0], [0], [1], [0, 0, 1, 1], [], []>} : vector<2x16xf32>, vector<16x48xf32>, vector<2x48xf32> -> vector<2x48xf32>
    %501 = vector.broadcast %30 : vector<1x48xf32> to vector<2x48xf32>
    %502 = arith.addf %500, %501 : vector<2x48xf32>
    %503 = vector.extract_strided_slice %499 {offsets = [0, 0], sizes = [2, 16], strides = [1, 1]} : vector<2x48xf32> to vector<2x16xf32>
    %504 = vector.extract_strided_slice %502 {offsets = [0, 0], sizes = [2, 16], strides = [1, 1]} : vector<2x48xf32> to vector<2x16xf32>
    %505 = arith.addf %503, %504 : vector<2x16xf32>
    %506 = arith.negf %505 : vector<2x16xf32>
    %507 = math.exp %506 : vector<2x16xf32>
    %cst_106 = arith.constant 1.000000e+00 : f32
    %508 = vector.broadcast %cst_106 : f32 to vector<2x16xf32>
    %509 = arith.addf %508, %507 : vector<2x16xf32>
    %510 = arith.divf %508, %509 : vector<2x16xf32>
    %511 = vector.extract_strided_slice %499 {offsets = [0, 16], sizes = [2, 16], strides = [1, 1]} : vector<2x48xf32> to vector<2x16xf32>
    %512 = vector.extract_strided_slice %502 {offsets = [0, 16], sizes = [2, 16], strides = [1, 1]} : vector<2x48xf32> to vector<2x16xf32>
    %513 = arith.addf %511, %512 : vector<2x16xf32>
    %514 = arith.negf %513 : vector<2x16xf32>
    %515 = math.exp %514 : vector<2x16xf32>
    %cst_107 = arith.constant 1.000000e+00 : f32
    %516 = vector.broadcast %cst_107 : f32 to vector<2x16xf32>
    %517 = arith.addf %516, %515 : vector<2x16xf32>
    %518 = arith.divf %516, %517 : vector<2x16xf32>
    %519 = vector.extract_strided_slice %499 {offsets = [0, 32], sizes = [2, 16], strides = [1, 1]} : vector<2x48xf32> to vector<2x16xf32>
    %520 = vector.extract_strided_slice %502 {offsets = [0, 32], sizes = [2, 16], strides = [1, 1]} : vector<2x48xf32> to vector<2x16xf32>
    %521 = arith.mulf %510, %520 : vector<2x16xf32>
    %522 = arith.addf %519, %521 : vector<2x16xf32>
    %523 = math.tanh %522 : vector<2x16xf32>
    %cst_108 = arith.constant 1.000000e+00 : f32
    %524 = vector.broadcast %cst_108 : f32 to vector<2x16xf32>
    %525 = arith.subf %524, %518 : vector<2x16xf32>
    %526 = arith.mulf %525, %523 : vector<2x16xf32>
    %527 = arith.mulf %518, %466 : vector<2x16xf32>
    %528 = arith.addf %526, %527 : vector<2x16xf32>
    %529 = tpu.concatenate %94, %156, %218, %280, %342, %404, %466, %528 in 0 : vector<2x16xf32>, vector<2x16xf32>, vector<2x16xf32>, vector<2x16xf32>, vector<2x16xf32>, vector<2x16xf32>, vector<2x16xf32>, vector<2x16xf32> -> vector<16x16xf32>
    %c0_109 = arith.constant 0 : index
    %c0_110 = arith.constant 0 : index
    %530 = vector.load %arg4[%c0_109, %c0_110] : memref<16x16xf32, #tpu.memory_space<vmem>>, vector<16x16xf32>
    %cst_111 = arith.constant dense<0.000000e+00> : vector<16x16xf32>
    %531 = tpu.matmul %530, %529, %cst_111 {dimension_numbers = #tpu.dot_dimension_numbers<[1], [0], [0], [1], [0, 0, 1, 1], [], []>} : vector<16x16xf32>, vector<16x16xf32>, vector<16x16xf32> -> vector<16x16xf32>
    %c0_112 = arith.constant 0 : index
    %c0_113 = arith.constant 0 : index
    %532 = vector.load %arg10[%c0_112, %c0_113] : memref<16x9xf32, #tpu.memory_space<vmem>>, vector<16x9xf32>
    %cst_114 = arith.constant dense<0.000000e+00> : vector<16x9xf32>
    %533 = tpu.matmul %531, %532, %cst_114 {dimension_numbers = #tpu.dot_dimension_numbers<[1], [0], [0], [1], [0, 0, 1, 1], [], []>} : vector<16x16xf32>, vector<16x9xf32>, vector<16x9xf32> -> vector<16x9xf32>
    %c0_115 = arith.constant 0 : index
    %c0_116 = arith.constant 0 : index
    %534 = vector.load %arg11[%c0_115, %c0_116] : memref<1x9xf32, #tpu.memory_space<vmem>>, vector<1x9xf32>
    %535 = vector.broadcast %534 : vector<1x9xf32> to vector<16x9xf32>
    %536 = arith.addf %533, %535 : vector<16x9xf32>
    %c0_117 = arith.constant 0 : index
    %c0_118 = arith.constant 0 : index
    %537 = vector.load %arg19[%c0_117, %c0_118] : memref<16x9xf32, #tpu.memory_space<vmem>>, vector<16x9xf32>
    tpu.vector_store %arg19[%c0_117, %c0_118], %536 {strides = array<i32>} : memref<16x9xf32, #tpu.memory_space<vmem>>, vector<16x9xf32>,
    %c0_119 = arith.constant 0 : index
    %c0_120 = arith.constant 0 : index
    %538 = vector.load %arg12[%c0_119, %c0_120] : memref<9x48xf32, #tpu.memory_space<vmem>>, vector<9x48xf32>
    %cst_121 = arith.constant dense<0.000000e+00> : vector<16x48xf32>
    %539 = tpu.matmul %536, %538, %cst_121 {dimension_numbers = #tpu.dot_dimension_numbers<[1], [0], [0], [1], [0, 0, 1, 1], [], []>} : vector<16x9xf32>, vector<9x48xf32>, vector<16x48xf32> -> vector<16x48xf32>
    %c0_122 = arith.constant 0 : index
    %c0_123 = arith.constant 0 : index
    %540 = vector.load %arg14[%c0_122, %c0_123] : memref<1x48xf32, #tpu.memory_space<vmem>>, vector<1x48xf32>
    %541 = vector.broadcast %540 : vector<1x48xf32> to vector<16x48xf32>
    %542 = arith.addf %539, %541 : vector<16x48xf32>
    %c0_124 = arith.constant 0 : index
    %c0_125 = arith.constant 0 : index
    %543 = vector.load %arg13[%c0_124, %c0_125] : memref<16x48xf32, #tpu.memory_space<vmem>>, vector<16x48xf32>
    %c0_126 = arith.constant 0 : index
    %c0_127 = arith.constant 0 : index
    %544 = vector.load %arg15[%c0_126, %c0_127] : memref<1x48xf32, #tpu.memory_space<vmem>>, vector<1x48xf32>
    %cst_128 = arith.constant 0.000000e+00 : f32
    %545 = vector.broadcast %cst_128 : f32 to vector<8x16xf32>
    %546 = vector.extract_strided_slice %542 {offsets = [0, 0], sizes = [8, 48], strides = [1, 1]} : vector<16x48xf32> to vector<8x48xf32>
    %cst_129 = arith.constant dense<0.000000e+00> : vector<8x48xf32>
    %547 = tpu.matmul %545, %543, %cst_129 {dimension_numbers = #tpu.dot_dimension_numbers<[1], [0], [0], [1], [0, 0, 1, 1], [], []>} : vector<8x16xf32>, vector<16x48xf32>, vector<8x48xf32> -> vector<8x48xf32>
    %548 = vector.broadcast %544 : vector<1x48xf32> to vector<8x48xf32>
    %549 = arith.addf %547, %548 : vector<8x48xf32>
    %550 = vector.extract_strided_slice %546 {offsets = [0, 0], sizes = [8, 16], strides = [1, 1]} : vector<8x48xf32> to vector<8x16xf32>
    %551 = vector.extract_strided_slice %549 {offsets = [0, 0], sizes = [8, 16], strides = [1, 1]} : vector<8x48xf32> to vector<8x16xf32>
    %552 = arith.addf %550, %551 : vector<8x16xf32>
    %553 = arith.negf %552 : vector<8x16xf32>
    %554 = math.exp %553 : vector<8x16xf32>
    %cst_130 = arith.constant 1.000000e+00 : f32
    %555 = vector.broadcast %cst_130 : f32 to vector<8x16xf32>
    %556 = arith.addf %555, %554 : vector<8x16xf32>
    %557 = arith.divf %555, %556 : vector<8x16xf32>
    %558 = vector.extract_strided_slice %546 {offsets = [0, 16], sizes = [8, 16], strides = [1, 1]} : vector<8x48xf32> to vector<8x16xf32>
    %559 = vector.extract_strided_slice %549 {offsets = [0, 16], sizes = [8, 16], strides = [1, 1]} : vector<8x48xf32> to vector<8x16xf32>
    %560 = arith.addf %558, %559 : vector<8x16xf32>
    %561 = arith.negf %560 : vector<8x16xf32>
    %562 = math.exp %561 : vector<8x16xf32>
    %cst_131 = arith.constant 1.000000e+00 : f32
    %563 = vector.broadcast %cst_131 : f32 to vector<8x16xf32>
    %564 = arith.addf %563, %562 : vector<8x16xf32>
    %565 = arith.divf %563, %564 : vector<8x16xf32>
    %566 = vector.extract_strided_slice %546 {offsets = [0, 32], sizes = [8, 16], strides = [1, 1]} : vector<8x48xf32> to vector<8x16xf32>
    %567 = vector.extract_strided_slice %549 {offsets = [0, 32], sizes = [8, 16], strides = [1, 1]} : vector<8x48xf32> to vector<8x16xf32>
    %568 = arith.mulf %557, %567 : vector<8x16xf32>
    %569 = arith.addf %566, %568 : vector<8x16xf32>
    %570 = math.tanh %569 : vector<8x16xf32>
    %cst_132 = arith.constant 1.000000e+00 : f32
    %571 = vector.broadcast %cst_132 : f32 to vector<8x16xf32>
    %572 = arith.subf %571, %565 : vector<8x16xf32>
    %573 = arith.mulf %572, %570 : vector<8x16xf32>
    %574 = arith.mulf %565, %545 : vector<8x16xf32>
    %575 = arith.addf %573, %574 : vector<8x16xf32>
    %576 = vector.extract_strided_slice %542 {offsets = [8, 0], sizes = [8, 48], strides = [1, 1]} : vector<16x48xf32> to vector<8x48xf32>
    %cst_133 = arith.constant dense<0.000000e+00> : vector<8x48xf32>
    %577 = tpu.matmul %575, %543, %cst_133 {dimension_numbers = #tpu.dot_dimension_numbers<[1], [0], [0], [1], [0, 0, 1, 1], [], []>} : vector<8x16xf32>, vector<16x48xf32>, vector<8x48xf32> -> vector<8x48xf32>
    %578 = vector.broadcast %544 : vector<1x48xf32> to vector<8x48xf32>
    %579 = arith.addf %577, %578 : vector<8x48xf32>
    %580 = vector.extract_strided_slice %576 {offsets = [0, 0], sizes = [8, 16], strides = [1, 1]} : vector<8x48xf32> to vector<8x16xf32>
    %581 = vector.extract_strided_slice %579 {offsets = [0, 0], sizes = [8, 16], strides = [1, 1]} : vector<8x48xf32> to vector<8x16xf32>
    %582 = arith.addf %580, %581 : vector<8x16xf32>
    %583 = arith.negf %582 : vector<8x16xf32>
    %584 = math.exp %583 : vector<8x16xf32>
    %cst_134 = arith.constant 1.000000e+00 : f32
    %585 = vector.broadcast %cst_134 : f32 to vector<8x16xf32>
    %586 = arith.addf %585, %584 : vector<8x16xf32>
    %587 = arith.divf %585, %586 : vector<8x16xf32>
    %588 = vector.extract_strided_slice %576 {offsets = [0, 16], sizes = [8, 16], strides = [1, 1]} : vector<8x48xf32> to vector<8x16xf32>
    %589 = vector.extract_strided_slice %579 {offsets = [0, 16], sizes = [8, 16], strides = [1, 1]} : vector<8x48xf32> to vector<8x16xf32>
    %590 = arith.addf %588, %589 : vector<8x16xf32>
    %591 = arith.negf %590 : vector<8x16xf32>
    %592 = math.exp %591 : vector<8x16xf32>
    %cst_135 = arith.constant 1.000000e+00 : f32
    %593 = vector.broadcast %cst_135 : f32 to vector<8x16xf32>
    %594 = arith.addf %593, %592 : vector<8x16xf32>
    %595 = arith.divf %593, %594 : vector<8x16xf32>
    %596 = vector.extract_strided_slice %576 {offsets = [0, 32], sizes = [8, 16], strides = [1, 1]} : vector<8x48xf32> to vector<8x16xf32>
    %597 = vector.extract_strided_slice %579 {offsets = [0, 32], sizes = [8, 16], strides = [1, 1]} : vector<8x48xf32> to vector<8x16xf32>
    %598 = arith.mulf %587, %597 : vector<8x16xf32>
    %599 = arith.addf %596, %598 : vector<8x16xf32>
    %600 = math.tanh %599 : vector<8x16xf32>
    %cst_136 = arith.constant 1.000000e+00 : f32
    %601 = vector.broadcast %cst_136 : f32 to vector<8x16xf32>
    %602 = arith.subf %601, %595 : vector<8x16xf32>
    %603 = arith.mulf %602, %600 : vector<8x16xf32>
    %604 = arith.mulf %595, %575 : vector<8x16xf32>
    %605 = arith.addf %603, %604 : vector<8x16xf32>
    %c0_137 = arith.constant 0 : index
    %c0_138 = arith.constant 0 : index
    %606 = vector.load %arg5[%c0_137, %c0_138] : memref<16x16xf32, #tpu.memory_space<vmem>>, vector<16x16xf32>
    %607 = tpu.concatenate %575, %605 in 0 : vector<8x16xf32>, vector<8x16xf32> -> vector<16x16xf32>
    %cst_139 = arith.constant dense<0.000000e+00> : vector<16x16xf32>
    %608 = tpu.matmul %606, %607, %cst_139 {dimension_numbers = #tpu.dot_dimension_numbers<[1], [0], [0], [1], [0, 0, 1, 1], [], []>} : vector<16x16xf32>, vector<16x16xf32>, vector<16x16xf32> -> vector<16x16xf32>
    %c0_140 = arith.constant 0 : index
    %c0_141 = arith.constant 0 : index
    %609 = vector.load %arg16[%c0_140, %c0_141] : memref<16x24xf32, #tpu.memory_space<vmem>>, vector<16x24xf32>
    %cst_142 = arith.constant dense<0.000000e+00> : vector<16x24xf32>
    %610 = tpu.matmul %608, %609, %cst_142 {dimension_numbers = #tpu.dot_dimension_numbers<[1], [0], [0], [1], [0, 0, 1, 1], [], []>} : vector<16x16xf32>, vector<16x24xf32>, vector<16x24xf32> -> vector<16x24xf32>
    %c0_143 = arith.constant 0 : index
    %c0_144 = arith.constant 0 : index
    %611 = vector.load %arg17[%c0_143, %c0_144] : memref<1x24xf32, #tpu.memory_space<vmem>>, vector<1x24xf32>
    %612 = vector.broadcast %611 : vector<1x24xf32> to vector<16x24xf32>
    %613 = arith.addf %610, %612 : vector<16x24xf32>
    %c0_145 = arith.constant 0 : index
    %c0_146 = arith.constant 0 : index
    %614 = vector.load %arg20[%c0_145, %c0_146] : memref<16x24xf32, #tpu.memory_space<vmem>>, vector<16x24xf32>
    tpu.vector_store %arg20[%c0_145, %c0_146], %613 {strides = array<i32>} : memref<16x24xf32, #tpu.memory_space<vmem>>, vector<16x24xf32>,
    return
  }
}

</mosaic_0001>

<bundles_post_ra>
// kernel: eq.26
= control target key start
LH: loop header
LB: loop body
LE: loop exit
PB: predicated region body
PF: predicated region fallthrough
CT: control target
= control target key end

     0   :  { %s83_s10 = smov 18   ;;  %s84_s11 = smov 14   ;;  %vm3_vm0 = vcmask 15360   ;;  %vm9_vm1 = vcmask 162960   ;;  %vm15_vm2 = vcmask 146560   ;;  %vm21_vm3 = vcmask 130160   ;;  %s135_s0 = inlined_call_operand.vmem [shape: s32[10,2], index: 0, kind: input, shape index: {}]   ;;  %s136_s1 = inlined_call_operand.vmem [shape: s32[20], index: 1, kind: output, shape index: {}]  }
   0x1   :  { %v65_v0 = vld [vmem:[%s135_s0 + $0x9] sm:$0x1]   ;;  %v67_v1 = vld [vmem:[%s135_s0 + $0x7] sm:$0x1]   ;;  %v66_v2 = vld [vmem:[%s135_s0 + $0x8] sm:$0x1]  }
   0x2   :  { %7 = vrot.lane.b32.xlu0 %v65_v0, %s83_s10  ;;  %19 = vrot.lane.b32.xlu1 %v67_v1, %s84_s11  ;;  %v68_v3 = vld [vmem:[%s135_s0 + $0x6] sm:$0x1]   ;;  %v2_v4 = vld [vmem:[%s135_s0] sm:$0x1]   ;;  %s85_s18 = smov 16   ;;  %s86_s19 = smov 12  }
   0x3   :  { %v69_v5 = vld [vmem:[%s135_s0 + $0x5] sm:$0x1]   ;;  %v70_v6 = vld [vmem:[%s135_s0 + $0x4] sm:$0x1]   ;;  %4 = vst.msk [vmem:[#allocation0] sm:$0x1] %vm3_vm0, %v2_v4  }
   0x4   :  { %s87_s24 = smov 10   ;;  %s88_s25 = smov 8   ;;  %v71_v7 = vld [vmem:[%s135_s0 + $0x3] sm:$0x1]   ;;  %v72_v8 = vld [vmem:[%s135_s0 + $0x2] sm:$0x1]  }
   0x5   :  { %s89_s30 = smov 6   ;;  %s90_s2 = smov 4   ;;  %v73_v9 = vld [vmem:[%s135_s0 + $0x1] sm:$0x1]   ;;  %vm27_vm4 = vcmask 113760   ;;  %vm33_vm5 = vcmask 97360  }
   0x6   :  { %13 = vrot.lane.b32.xlu0 %v66_v2, %s85_s18  ;;  %25 = vrot.lane.b32.xlu1 %v68_v3, %s86_s19  ;;  %s91_s0 = smov 2   ;;  %vm39_vm6 = vcmask 80960   ;;  %vm45_vm7 = vcmask 64560   ;;  %vm51_vm8 = vcmask 48160   ;;  %vm57_vm9 = vcmask 31760  }
   0xa   :  { %31 = vrot.lane.b32.xlu0 %v69_v5, %s87_s24  ;;  %37 = vrot.lane.b32.xlu1 %v70_v6, %s88_s25 }
   0xe   :  { %43 = vrot.lane.b32.xlu0 %v71_v7, %s89_s30  ;;  %49 = vrot.lane.b32.xlu1 %v72_v8, %s90_s2 }
  0x12   :  { %55 = vrot.lane.b32.xlu0 %v73_v9, %s91_s0 }
  0x74   :  { %v8_v10 = vpop.permute.xlu0 %7   ;;  %v20_v11 = vpop.permute.xlu1 %19  }
  0x75   :  { %10 = vst.msk [vmem:[#allocation0] sm:$0x1] %vm9_vm1, %v8_v10  }
  0x78   :  { %v14_v12 = vpop.permute.xlu0 %13   ;;  %v26_v13 = vpop.permute.xlu1 %25  }
  0x79   :  { %16 = vst.msk [vmem:[#allocation0] sm:$0x1] %vm15_vm2, %v14_v12  }
  0x7a   :  { %22 = vst.msk [vmem:[#allocation0] sm:$0x1] %vm21_vm3, %v20_v11  }
  0x7b   :  { %28 = vst.msk [vmem:[#allocation0] sm:$0x1] %vm27_vm4, %v26_v13  }
  0x7c   :  { %v32_v14 = vpop.permute.xlu0 %31   ;;  %v38_v15 = vpop.permute.xlu1 %37  }
  0x7d   :  { %34 = vst.msk [vmem:[#allocation0] sm:$0x1] %vm33_vm5, %v32_v14  }
  0x7e   :  { %40 = vst.msk [vmem:[#allocation0] sm:$0x1] %vm39_vm6, %v38_v15  }
  0x80   :  { %v44_v16 = vpop.permute.xlu0 %43   ;;  %v50_v17 = vpop.permute.xlu1 %49  }
  0x81   :  { %46 = vst.msk [vmem:[#allocation0] sm:$0x1] %vm45_vm7, %v44_v16  }
  0x82   :  { %52 = vst.msk [vmem:[#allocation0] sm:$0x1] %vm51_vm8, %v50_v17  }
  0x84   :  { %v56_v18 = vpop.permute.xlu0 %55  }
  0x85   :  { %58 = vst.msk [vmem:[#allocation0] sm:$0x1] %vm57_vm9, %v56_v18  }
  0x8c   :  { %v62_v19 = vld [vmem:[#allocation0] sm:$0x1] }
  0x8d   :  { %64 = vst [vmem:[%s136_s1] sm:$0x1] %v62_v19 }

// kernel: eq.29
= control target key start
LH: loop header
LB: loop body
LE: loop exit
PB: predicated region body
PF: predicated region fallthrough
CT: control target
= control target key end

     0   :  { %s67_s10 = smov 14   ;;  %s68_s11 = smov 10   ;;  %vm3_vm0 = vcmask 15360   ;;  %vm9_vm1 = vcmask 130160   ;;  %vm15_vm2 = vcmask 113760   ;;  %vm21_vm3 = vcmask 97360   ;;  %s111_s0 = inlined_call_operand.vmem [shape: s32[8,2], index: 0, kind: input, shape index: {}]   ;;  %s112_s1 = inlined_call_operand.vmem [shape: s32[16], index: 1, kind: output, shape index: {}]  }
   0x1   :  { %v53_v0 = vld [vmem:[%s111_s0 + $0x7] sm:$0x1]   ;;  %v55_v1 = vld [vmem:[%s111_s0 + $0x5] sm:$0x1]   ;;  %v54_v2 = vld [vmem:[%s111_s0 + $0x6] sm:$0x1]  }
   0x2   :  { %7 = vrot.lane.b32.xlu0 %v53_v0, %s67_s10  ;;  %19 = vrot.lane.b32.xlu1 %v55_v1, %s68_s11  ;;  %v56_v3 = vld [vmem:[%s111_s0 + $0x4] sm:$0x1]   ;;  %v2_v4 = vld [vmem:[%s111_s0] sm:$0x1]   ;;  %s69_s18 = smov 12   ;;  %s70_s19 = smov 8  }
   0x3   :  { %4 = vst.msk [vmem:[#allocation0] sm:$0x1] %vm3_vm0, %v2_v4   ;;  %v57_v5 = vld [vmem:[%s111_s0 + $0x3] sm:$0x1]   ;;  %v58_v6 = vld [vmem:[%s111_s0 + $0x2] sm:$0x1]  }
   0x4   :  { %s71_s24 = smov 6   ;;  %s72_s25 = smov 4   ;;  %v59_v7 = vld [vmem:[%s111_s0 + $0x1] sm:$0x1]   ;;  %vm27_vm4 = vcmask 80960   ;;  %vm33_vm5 = vcmask 64560  }
   0x5   :  { %s73_s0 = smov 2   ;;  %vm39_vm6 = vcmask 48160   ;;  %vm45_vm7 = vcmask 31760  }
   0x6   :  { %13 = vrot.lane.b32.xlu0 %v54_v2, %s69_s18  ;;  %25 = vrot.lane.b32.xlu1 %v56_v3, %s70_s19 }
   0xa   :  { %31 = vrot.lane.b32.xlu0 %v57_v5, %s71_s24  ;;  %37 = vrot.lane.b32.xlu1 %v58_v6, %s72_s25 }
   0xe   :  { %43 = vrot.lane.b32.xlu0 %v59_v7, %s73_s0 }
  0x74   :  { %v8_v8 = vpop.permute.xlu0 %7   ;;  %v20_v9 = vpop.permute.xlu1 %19  }
  0x75   :  { %10 = vst.msk [vmem:[#allocation0] sm:$0x1] %vm9_vm1, %v8_v8  }
  0x78   :  { %v14_v10 = vpop.permute.xlu0 %13   ;;  %v26_v11 = vpop.permute.xlu1 %25  }
  0x79   :  { %16 = vst.msk [vmem:[#allocation0] sm:$0x1] %vm15_vm2, %v14_v10  }
  0x7a   :  { %22 = vst.msk [vmem:[#allocation0] sm:$0x1] %vm21_vm3, %v20_v9  }
  0x7b   :  { %28 = vst.msk [vmem:[#allocation0] sm:$0x1] %vm27_vm4, %v26_v11  }
  0x7c   :  { %v32_v12 = vpop.permute.xlu0 %31   ;;  %v38_v13 = vpop.permute.xlu1 %37  }
  0x7d   :  { %34 = vst.msk [vmem:[#allocation0] sm:$0x1] %vm33_vm5, %v32_v12  }
  0x7e   :  { %40 = vst.msk [vmem:[#allocation0] sm:$0x1] %vm39_vm6, %v38_v13  }
  0x80   :  { %v44_v14 = vpop.permute.xlu0 %43  }
  0x81   :  { %46 = vst.msk [vmem:[#allocation0] sm:$0x1] %vm45_vm7, %v44_v14  }
  0x88   :  { %v50_v15 = vld [vmem:[#allocation0] sm:$0x1] }
  0x89   :  { %52 = vst [vmem:[%s112_s1] sm:$0x1] %v50_v15 }

// kernel: _lambda_.1
= control target key start
LH: loop header
LB: loop body
LE: loop exit
PB: predicated region body
PF: predicated region fallthrough
CT: control target
= control target key end

     0   :  { %s4687_s0 = inlined_call_operand.vmem [shape: f32[20,192], index: 0, kind: input, shape index: {}]   ;;  %s4688_s1 = inlined_call_operand.vmem [shape: f32[16,20], index: 1, kind: input, shape index: {}]   ;;  %s4689_s2 = inlined_call_operand.vmem [shape: f32[192,26], index: 2, kind: input, shape index: {}]   ;;  %s4690_s3 = inlined_call_operand.vmem [shape: f32[1,26], index: 3, kind: input, shape index: {}]   ;;  %s4691_s4 = inlined_call_operand.vmem [shape: f32[16,16], index: 4, kind: input, shape index: {}]   ;;  %s4692_s5 = inlined_call_operand.vmem [shape: f32[16,16], index: 5, kind: input, shape index: {}]   ;;  %s4693_s6 = inlined_call_operand.vmem [shape: f32[2,16,48], index: 6, kind: input, shape index: {}]   ;;  %s4694_s7 = inlined_call_operand.vmem [shape: f32[2,16,48], index: 7, kind: input, shape index: {}]   ;;  %s4695_s8 = inlined_call_operand.vmem [shape: f32[2,1,48], index: 8, kind: input, shape index: {}]   ;;  %s4696_s9 = inlined_call_operand.vmem [shape: f32[2,1,48], index: 9, kind: input, shape index: {}]   ;;  %s4697_s10 = inlined_call_operand.vmem [shape: f32[16,9], index: 10, kind: input, shape index: {}]   ;;  %s4698_s11 = inlined_call_operand.vmem [shape: f32[1,9], index: 11, kind: input, shape index: {}]   ;;  %s4699_s12 = inlined_call_operand.vmem [shape: f32[9,48], index: 12, kind: input, shape index: {}]   ;;  %s4700_s13 = inlined_call_operand.vmem [shape: f32[16,48], index: 13, kind: input, shape index: {}]   ;;  %s4701_s14 = inlined_call_operand.vmem [shape: f32[1,48], index: 14, kind: input, shape index: {}]   ;;  %s4702_s15 = inlined_call_operand.vmem [shape: f32[1,48], index: 15, kind: input, shape index: {}]   ;;  %s4703_s16 = inlined_call_operand.vmem [shape: f32[16,24], index: 16, kind: input, shape index: {}]   ;;  %s4704_s17 = inlined_call_operand.vmem [shape: f32[1,24], index: 17, kind: input, shape index: {}]   ;;  %s4705_s18 = inlined_call_operand.vmem [shape: f32[16,26], index: 18, kind: output, shape index: {0}]   ;;  %s4706_s19 = inlined_call_operand.hbm [shape: f32[16,9], index: 19, kind: output, shape index: {1}]   ;;  %s4707_s20 = inlined_call_operand.vmem [shape: f32[16,24], index: 20, kind: output, shape index: {2}]  }
   0x1   :  { %4712 = sst [smem:[#allocation5_spill]] %s4687_s0 }
   0x2   :  { %4713 = sst [smem:[#allocation6_spill]] %s4688_s1 }
   0x3   :  { %4714 = sst [smem:[#allocation7_spill]] %s4689_s2 }
   0x4   :  { %4715 = sst [smem:[#allocation8_spill]] %s4690_s3 }
   0x5   :  { %4716 = sst [smem:[#allocation9_spill]] %s4691_s4 }
   0x6   :  { %s4717_s23 = sld [smem:[#allocation7_spill]]  ;;  %v4026_v3 = vmov 0.0|0.0   ;;  %vm93_vm0 = vcmask 523264   ;;  %s4718_s25 = sld [smem:[#allocation5_spill]] }
   0x7   :  { %3735 = vmatprep.subr.bf16.mxu0 %v4026_v3 }
   0xc   :  { %v69_v0 = vld [vmem:[%s4717_s23] sm:$0xff]  ;;  %v70_v1 = vld [vmem:[%s4717_s23 + $0x8] sm:$0xff]  ;;  %v71_v2 = vld [vmem:[%s4717_s23 + $0x10] sm:$0xff] }
   0xd   :  { %v3736_v4 = vpack.c.bf16 %v70_v1, %v69_v0  ;;  %v72_v5 = vld [vmem:[%s4717_s23 + $0x18] sm:$0xff]  ;;  %v73_v7 = vld [vmem:[%s4717_s23 + $0x20] sm:$0xff]  ;;  %v74_v8 = vld [vmem:[%s4717_s23 + $0x28] sm:$0xff] }
   0xe   :  { %v3739_v6 = vpack.c.bf16 %v72_v5, %v71_v2  ;;  %v3742_v9 = vpack.c.bf16 %v74_v8, %v73_v7  ;;  %v75_v10 = vld [vmem:[%s4717_s23 + $0x30] sm:$0xff]  ;;  %v76_v11 = vld [vmem:[%s4717_s23 + $0x38] sm:$0xff]  ;;  %v64_v12 = vld [vmem:[%s4718_s25 + $0x8] sm:$0xff] }
   0xf   :  { %3737 = vmatpush1.bf16.msra.mxu0 %v3736_v4  ;;  %3320 = vmatprep.mubr.msk.f32.mxu0 %vm93_vm0, %v64_v12 }
  0x10   :  { %3738 = vmatprep.subr.bf16.mxu0 %v4026_v3 }
  0x13   :  { %3740 = vmatpush1.bf16.msra.mxu0 %v3739_v6 }
  0x14   :  { %3741 = vmatprep.subr.bf16.mxu0 %v4026_v3 }
  0x15   :  { %26 = vsyncpa [#allocation3], 0  ;;  %v3745_v13 = vpack.c.bf16 %v76_v11, %v75_v10  ;;  %v77_v14 = vld [vmem:[%s4717_s23 + $0x40] sm:$0xff]  ;;  %v78_v15 = vld [vmem:[%s4717_s23 + $0x48] sm:$0xff]  ;;  %s4719_s4 = sld [smem:[#allocation6_spill]]  ;;  %vm192_vm1 = vcmask 162816  }
  0x16   :  { %v3748_v16 = vpack.c.bf16 %v78_v15, %v77_v14  ;;  %v79_v17 = vld [vmem:[%s4717_s23 + $0x50] sm:$0xff]  ;;  %v80_v18 = vld [vmem:[%s4717_s23 + $0x58] sm:$0xff]  ;;  %v81_v20 = vld [vmem:[%s4717_s23 + $0x60] sm:$0xff]  ;;  %vm199_vm2 = vcmask 1043456   ;;  %vm4027_vm3 = vmmov 0   ;;  %v4028_v58 = vmov 0.0  }
  0x17   :  { %3743 = vmatpush1.bf16.msra.mxu0 %v3742_v9  ;;  %v3751_v19 = vpack.c.bf16 %v80_v18, %v79_v17  ;;  %v82_v21 = vld [vmem:[%s4717_s23 + $0x68] sm:$0xff]  ;;  %v83_v23 = vld [vmem:[%s4717_s23 + $0x70] sm:$0xff]  ;;  %v84_v24 = vld [vmem:[%s4717_s23 + $0x78] sm:$0xff]  ;;  %s4720_s27 = sld [smem:[#allocation8_spill]]  ;;  %vm278_vm4 = vcmask 211968   ;;  %vm292_vm5 = vcmask 130048  }
  0x18   :  { %3744 = vmatprep.subr.bf16.mxu0 %v4026_v3  ;;  %v3754_v22 = vpack.c.bf16 %v82_v21, %v81_v20  ;;  %v3757_v25 = vpack.c.bf16 %v84_v24, %v83_v23  ;;  %v85_v26 = vld [vmem:[%s4717_s23 + $0x80] sm:$0xff]  ;;  %v86_v27 = vld [vmem:[%s4717_s23 + $0x88] sm:$0xff]  ;;  %v87_v29 = vld [vmem:[%s4717_s23 + $0x90] sm:$0xff]  ;;  %s4029_s1 = smov 96   ;;  %s4030_s22 = smov 32   ;;  %vm2623_vm6 = vcmask 1041408  }
  0x19   :  { %v3760_v28 = vpack.c.bf16 %v86_v27, %v85_v26  ;;  %v88_v30 = vld [vmem:[%s4717_s23 + $0x98] sm:$0xff]  ;;  %v89_v32 = vld [vmem:[%s4717_s23 + $0xa0] sm:$0xff]  ;;  %v90_v33 = vld [vmem:[%s4717_s23 + $0xa8] sm:$0xff]  ;;  %s4031_s26 = smov 112   ;;  %vm2626_vm7 = vcmask 1045504   ;;  %vm2830_vm8 = vcmask 1040384  }
  0x1a   :  { %v3763_v31 = vpack.c.bf16 %v88_v30, %v87_v29  ;;  %v3766_v34 = vpack.c.bf16 %v90_v33, %v89_v32  ;;  %v91_v35 = vld [vmem:[%s4717_s23 + $0xb0] sm:$0xff]  ;;  %v92_v36 = vld [vmem:[%s4717_s23 + $0xb8] sm:$0xff]  ;;  %v63_v38 = vld [vmem:[%s4718_s25] sm:$0xff]  ;;  %vm4032_vm9 = vmmov 1   ;;  %vm2812_vm11 = vcmask 72704  }
  0x1b   :  { %3746 = vmatpush1.bf16.msra.mxu0 %v3745_v13  ;;  %v3769_v37 = vpack.c.bf16 %v92_v36, %v91_v35  ;;  %v66_v39 = vld [vmem:[%s4718_s25 + $0x18] sm:$0xff]  ;;  %v65_v40 = vld [vmem:[%s4718_s25 + $0x10] sm:$0xff]  ;;  %v68_v41 = vld [vmem:[%s4718_s25 + $0x28] sm:$0xf] }
  0x1c   :  { %3747 = vmatprep.subr.bf16.mxu0 %v4026_v3  ;;  %v67_v42 = vld [vmem:[%s4718_s25 + $0x20] sm:$0xf]  ;;  %v184_v51 = vld [vmem:[%s4719_s4 + $0x8] sm:$0xff]  ;;  %v3330_v21 = vld [vmem:[%s4693_s6 + $0x10] sm:$0xff] }
  0x1d   :  { %v183_v43 = vld [vmem:[%s4719_s4] sm:$0xff]  ;;  %v284_v53 = vld [vmem:[%s4693_s6 + $0x8] sm:$0xff]  ;;  %v3332_v30 = vld [vmem:[%s4694_s7 + $0x10] sm:$0xff] }
  0x1e   :  { %3508 = vmatprep.mubr.msk.f32.mxu1 %vm192_vm1, %v183_v43  ;;  %v283_v52 = vld [vmem:[%s4693_s6] sm:$0xff]  ;;  %v378_v56 = vld [vmem:[%s4694_s7 + $0x8] sm:$0xff]  ;;  %vm3860_vm10 = vmpackc.low %vm2830_vm8, %vm4032_vm9 }
  0x1f   :  { %3749 = vmatpush1.bf16.msra.mxu0 %v3748_v16  ;;  %v3775_v54 = vpack.c.bf16 %v284_v53, %v283_v52  ;;  %v377_v55 = vld [vmem:[%s4694_s7] sm:$0xff] }
  0x20   :  { %3750 = vmatprep.subr.bf16.mxu0 %v4026_v3  ;;  %v4268_v57 = vpack.c.bf16 %v378_v56, %v377_v55  ;;  %v3323_v59 = vld [vmem:[%s4720_s27] ss:$0 sm:$0xff]  ;;  %v4350_v36 = vld [vmem:[%s4696_s9 + $0x1] ss:$0 sm:$0xff] }
  0x21   :  { %v3327_v2 = vld [vmem:[%s4695_s8] ss:$0 sm:$0xff] }
  0x22   :  { %v4300_v7 = vld [vmem:[%s4696_s9] ss:$0 sm:$0xff] }
  0x23   :  { %3752 = vmatpush1.bf16.msra.mxu0 %v3751_v19 }
  0x24   :  { %3753 = vmatprep.subr.bf16.mxu0 %v4026_v3 }
  0x27   :  { %3755 = vmatpush1.bf16.msra.mxu0 %v3754_v22  ;;  %v3331_v22 = vld [vmem:[%s4693_s6 + $0x18] sm:$0xff] }
  0x28   :  { %3756 = vmatprep.subr.bf16.mxu0 %v4026_v3  ;;  %v4315_v23 = vpack.c.bf16 %v3331_v22, %v3330_v21 }
  0x2b   :  { %3758 = vmatpush1.bf16.msra.mxu0 %v3757_v25 }
  0x2c   :  { %3759 = vmatprep.subr.bf16.mxu0 %v4026_v3 }
  0x2f   :  { %3761 = vmatpush1.bf16.msra.mxu0 %v3760_v28 }
  0x30   :  { %3762 = vmatprep.subr.bf16.mxu0 %v4026_v3 }
  0x33   :  { %3764 = vmatpush1.bf16.msra.mxu0 %v3763_v31  ;;  %v3333_v31 = vld [vmem:[%s4694_s7 + $0x18] sm:$0xff] }
  0x34   :  { %3765 = vmatprep.subr.bf16.mxu0 %v4026_v3  ;;  %v4330_v32 = vpack.c.bf16 %v3333_v31, %v3332_v30 }
  0x37   :  { %3767 = vmatpush1.bf16.msra.mxu0 %v3766_v34 }
  0x38   :  { %3768 = vmatprep.subr.bf16.mxu0 %v4026_v3 }
  0x3b   :  { %3770 = vmatpush1.bf16.msra.mxu0 %v3769_v37 }
  0x3c   :  { %3815 = vmatprep.subr.bf16.mxu0 %v4026_v3 }
  0x3e   :  { %168 = vmatmul.mubr.f32.vlgmr.msra.gmra.mrb[0].mxu0 %v63_v38 }
  0x3f   :  { %3321 = vmatprep.mubr.msk.f32.mxu0 %vm93_vm0, %v66_v39  ;;  %3817 = vmatpush3.bf16.msra.mxu0 %v4268_v57 }
  0x40   :  { %3821 = vmatprep.subr.bf16.mxu0 %v4026_v3 }
  0x42   :  { %173 = vmatmul.mubr.f32.gmra.mrb[2].mxu0 %v65_v40 }
  0x43   :  { %3322 = vmatprep.mubr.msk.f32.mxu0 %vm93_vm0, %v68_v41 }
  0x46   :  { %178 = vmatmul.mubr.f32.gmra.mrb[4].mxu0 %v67_v42 }
  0x47   :  { %3606 = vmatprep.mubr.msk.f32.mxu0 %vm4027_vm3, %v4028_v58 }
 0x111   :  { %v169_v44 = vpop.f32.mrb[0].mxu0 }
 0x112   :  { %v171_v45 = vpop.f32.mrb[1].mxu0 }
 0x115   :  { %v174_v46 = vpop.f32.mrb[2].mxu0 }
 0x116   :  { %v3771_v47 = vpack.c.bf16 %v174_v46, %v169_v44  ;;  %v176_v48 = vpop.f32.mrb[3].mxu0  ;;  %v4359_v44 = vld [vmem:[%s4695_s8 + $0x1] ss:$0 sm:$0xff] }
 0x118   :  { %3772 = vmatprep.subr.bf16.mxu1 %v3771_v47 }
 0x119   :  { %3774 = vmatpush3.bf16.msra.mxu1 %v3771_v47  ;;  %v179_v49 = vpop.f32.mrb[4].mxu0 }
 0x11a   :  { %v181_v50 = vpop.f32.mrb[5].mxu0  ;;  %3506 = vmatprep.subr.msk.mxu1 %vm199_vm2, %v179_v49 }
 0x11d   :  { %3507 = vmatpush3.msk.msra.mxu1 %vm199_vm2, %v179_v49 }
 0x11e   :  { %3509 = vmatmul.mubr.msk.f32.vlgmr.msra.gmra.mrb[0].mxu1 %vm192_vm1, %v184_v51  ;;  %3776 = vmatprep.subr.bf16.mxu1 %v3775_v54 }
 0x11f   :  { %3778 = vmatpush3.bf16.msra.mxu1 %v3775_v54 }
 0x120   :  { %3779 = vmatprep.subr.bf16.mxu1 %v4026_v3 }
 0x1f1   :  { %v3510_v60 = vpop.f32.mrb[0].mxu1 }
 0x1f2   :  { %v275_v61 = vadd.f32 %v3510_v60, %v3323_v59  ;;  %v269_v62 = vpop.f32.mrb[1].mxu1 }
 0x1f3   :  { %v270_v63 = vadd.f32 %v3323_v59, %v269_v62 }
 0x1f4   :  { %280 = vst.msk [vmem:[%s4705_s18 + $0x8] sm:$0xff] %vm278_vm4, %v275_v61  ;;  %v282_v1 = vmax.f32 %v275_v61, 0.0 }
 0x1f5   :  { %279 = vst.msk [vmem:[%s4705_s18] sm:$0xff] %vm278_vm4, %v270_v63  ;;  %v281_v0 = vmax.f32 %v270_v63, 0.0  ;;  %s4721_s18 = sld [smem:[#allocation9_spill]] }
 0x1f7   :  { %3515 = vmatprep.mubr.msk.f32.mxu1 %vm292_vm5, %v281_v0 }
 0x1f8   :  { %3516 = vmatmul.mubr.msk.f32.vlgmr.msra.gmra.mrb[2].mxu1 %vm292_vm5, %v282_v1 }
 0x1f9   :  { %3781 = vmatpush3.bf16.msra.mxu1 %v4268_v57  ;;  %3522 = vmatprep.mubr.msk.f32.mxu1 %vm4027_vm3, %v4028_v58 }
 0x1fa   :  { %3782 = vmatprep.subr.bf16.mxu1 %v4026_v3 }
 0x1fc   :  { %3523 = vmatmul.mubr.f32.vlgmr.msra.gmra.mrb[4].mxu1 %v4028_v58 }
 0x1fd   :  { %3529 = vmatprep.mubr.msk.f32.mxu1 %vm4027_vm3, %v4028_v58  ;;  %3784 = vmatpush3.bf16.msra.mxu1 %v4315_v23 }
 0x1fe   :  { %3785 = vmatprep.subr.bf16.mxu1 %v4026_v3 }
 0x2cb   :  { %v3517_v4 = vpop.f32.mrb[2].mxu1 }
 0x2cc   :  { %v4295_v5 = vadd.f32 %v3517_v4, %v3327_v2  ;;  %v365_v6 = vpop.f32.mrb[3].mxu1 }
 0x2cd   :  { %v4304_v11 = vadd.f32 %v3327_v2, %v365_v6 }
 0x2cf   :  { %v462_v8 = vpop.f32.mrb[4].mxu1 }
 0x2d0   :  { %v463_v9 = vadd.f32 %v4300_v7, %v462_v8  ;;  %v3524_v10 = vpop.f32.mrb[5].mxu1 }
 0x2d2   :  { %474 = vrot.lane.b32.xlu0 %v463_v9, %s4029_s1  ;;  %v466_v12 = vadd.f32 %v463_v9, %v4304_v11 }
 0x2d4   :  { %v3337_v13 = vmul.f32 -1.442695, %v466_v12 }
 0x2d6   :  { %3894 = vpow2.f32 %v3337_v13 }
 0x2e0   :  { %v3895_v14 = vpop.eup %3894 }
 0x2e1   :  { %v470_v15 = vadd.f32 1.0, %v3895_v14 }
 0x2e3   :  { %3896 = vrcp.f32 %v470_v15 }
 0x2ed   :  { %v3897_v16 = vpop.eup %3896 }
 0x2ee   :  { %v484_v25 = vsub.f32 1.0, %v3897_v16  ;;  %v490_v27 = vmul.f32 0.0, %v3897_v16 }
 0x344   :  { %v475_v17 = vpop.permute.xlu0 %474 }
 0x345   :  { %v477_v18 = vmul.f32 %v3897_v16, %v475_v17 }
 0x347   :  { %479 = vrot.lane.b32.xlu0 %v477_v18, %s4030_s22 }
 0x3b9   :  { %v480_v19 = vpop.permute.xlu0 %479 }
 0x3ba   :  { %v482_v20 = vadd.f32 %v480_v19, %v4304_v11 }
 0x3bc   :  { %3898 = vtanh.f32 %v482_v20 }
 0x3c6   :  { %v3899_v24 = vpop.eup %3898 }
 0x3c7   :  { %486 = vrot.lane.b32.xlu1 %v3899_v24, %s4031_s26 }
 0x439   :  { %v487_v26 = vpop.permute.xlu1 %486 }
 0x43a   :  { %v489_v28 = vmul.f32 %v487_v26, %v484_v25 }
 0x43c   :  { %v4320_v29 = vadd.f32 %v490_v27, %v489_v28 }
 0x43e   :  { %499 = vrot.lane.b32.xlu1 %v4320_v29, %s4031_s26  ;;  %v771_v13 = vrot.slane %v4320_v29, 6 }
 0x4b0   :  { %v500_v33 = vpop.permute.xlu1 %499 }
 0x4b1   :  { %3530 = vmatmul.mubr.msk.f32.vlgmr.msra.gmra.mrb[6].mxu1 %vm292_vm5, %v500_v33 }
 0x4b2   :  { %3787 = vmatpush3.bf16.msra.mxu1 %v4330_v32  ;;  %3536 = vmatprep.mubr.msk.f32.mxu1 %vm4027_vm3, %v4028_v58 }
 0x4b3   :  { %3788 = vmatprep.subr.bf16.mxu1 %v4026_v3 }
 0x4b5   :  { %3537 = vmatmul.mubr.f32.vlgmr.msra.gmra.mrb[8].mxu1 %v4028_v58 }
 0x4b6   :  { %3790 = vmatpush3.bf16.msra.mxu1 %v4268_v57  ;;  %3543 = vmatprep.mubr.msk.f32.mxu1 %vm4027_vm3, %v4028_v58 }
 0x4b7   :  { %3791 = vmatprep.subr.bf16.mxu1 %v4026_v3 }
 0x4b9   :  { %3544 = vmatmul.mubr.msk.f32.vlgmr.msra.gmra.mrb[10].mxu1 %vm292_vm5, %v500_v33 }
 0x4ba   :  { %3793 = vmatpush3.bf16.msra.mxu1 %v4315_v23  ;;  %3550 = vmatprep.mubr.msk.f32.mxu1 %vm4027_vm3, %v4028_v58 }
 0x4bb   :  { %3794 = vmatprep.subr.bf16.mxu1 %v4026_v3 }
 0x584   :  { %v569_v34 = vpop.f32.mrb[6].mxu1 }
 0x585   :  { %v3531_v35 = vpop.f32.mrb[7].mxu1  ;;  %v570_v45 = vadd.f32 %v4359_v44, %v569_v34 }
 0x588   :  { %v645_v37 = vpop.f32.mrb[8].mxu1 }
 0x589   :  { %v646_v38 = vadd.f32 %v4350_v36, %v645_v37  ;;  %v3538_v39 = vpop.f32.mrb[9].mxu1 }
 0x58b   :  { %657 = vrot.lane.b32.xlu1 %v646_v38, %s4029_s1  ;;  %v649_v46 = vadd.f32 %v646_v38, %v570_v45 }
 0x58c   :  { %v741_v40 = vpop.f32.mrb[10].mxu1 }
 0x58d   :  { %v742_v41 = vadd.f32 %v4300_v7, %v741_v40  ;;  %v3545_v42 = vpop.f32.mrb[11].mxu1  ;;  %v3341_v47 = vmul.f32 -1.442695, %v649_v46 }
 0x58f   :  { %v746_v43 = vrot.slane %v742_v41, 6  ;;  %3900 = vpow2.f32 %v3341_v47 }
 0x591   :  { %755 = vrot.lane.b32.xlu0 %v746_v43, %s4029_s1  ;;  %v748_v48 = vadd.f32 %v746_v43, %v4304_v11 }
 0x593   :  { %v3343_v49 = vmul.f32 -1.442695, %v748_v48 }
 0x595   :  { %3902 = vpow2.f32 %v3343_v49 }
 0x599   :  { %v3901_v50 = vpop.eup %3900 }
 0x59a   :  { %v653_v51 = vadd.f32 1.0, %v3901_v50 }
 0x59c   :  { %3904 = vrcp.f32 %v653_v51 }
 0x59f   :  { %v3903_v52 = vpop.eup %3902 }
 0x5a0   :  { %v752_v53 = vadd.f32 1.0, %v3903_v52 }
 0x5a2   :  { %3906 = vrcp.f32 %v752_v53 }
 0x5a6   :  { %v3905_v54 = vpop.eup %3904 }
 0x5a7   :  { %v667_v6 = vsub.f32 1.0, %v3905_v54  ;;  %v673_v9 = vmul.f32 0.0, %v3905_v54 }
 0x5ac   :  { %v3907_v59 = vpop.eup %3906 }
 0x5ad   :  { %v765_v14 = vsub.f32 1.0, %v3907_v59  ;;  %v773_v17 = vmul.f32 %v3907_v59, %v771_v13 }
 0x5fd   :  { %v658_v55 = vpop.permute.xlu1 %657 }
 0x5fe   :  { %v660_v56 = vmul.f32 %v3905_v54, %v658_v55 }
 0x600   :  { %662 = vrot.lane.b32.xlu1 %v660_v56, %s4030_s22 }
 0x603   :  { %v756_v60 = vpop.permute.xlu0 %755 }
 0x604   :  { %v758_v61 = vmul.f32 %v3907_v59, %v756_v60 }
 0x606   :  { %760 = vrot.lane.b32.xlu0 %v758_v61, %s4030_s22 }
 0x672   :  { %v663_v62 = vpop.permute.xlu1 %662 }
 0x673   :  { %v665_v63 = vadd.f32 %v663_v62, %v570_v45 }
 0x675   :  { %3908 = vtanh.f32 %v665_v63 }
 0x678   :  { %v761_v0 = vpop.permute.xlu0 %760 }
 0x679   :  { %v763_v1 = vadd.f32 %v761_v0, %v4304_v11 }
 0x67b   :  { %3910 = vtanh.f32 %v763_v1 }
 0x67f   :  { %v3909_v2 = vpop.eup %3908 }
 0x680   :  { %669 = vrot.lane.b32.xlu1 %v3909_v2, %s4031_s26 }
 0x685   :  { %v3911_v4 = vpop.eup %3910 }
 0x686   :  { %767 = vrot.lane.b32.xlu0 %v3911_v4, %s4031_s26 }
 0x6f2   :  { %v670_v8 = vpop.permute.xlu1 %669 }
 0x6f3   :  { %v672_v10 = vmul.f32 %v670_v8, %v667_v6 }
 0x6f5   :  { %v4368_v12 = vadd.f32 %v673_v9, %v672_v10 }
 0x6f7   :  { %852 = vrot.lane.b32.xlu1 %v4368_v12, %s4031_s26 }
 0x6f8   :  { %v768_v15 = vpop.permute.xlu0 %767 }
 0x6f9   :  { %v770_v16 = vmul.f32 %v768_v15, %v765_v14 }
 0x6fb   :  { %v4373_v18 = vadd.f32 %v773_v17, %v770_v16 }
 0x6fd   :  { %v776_v19 = vrot.slane %v4373_v18, 2  ;;  %v1048_v63 = vrot.slane %v4373_v18, 6 }
 0x6ff   :  { %777 = vrot.lane.b32.xlu0 %v776_v19, %s4031_s26 }
 0x769   :  { %v853_v21 = vpop.permute.xlu1 %852 }
 0x771   :  { %v778_v20 = vpop.permute.xlu0 %777 }
 0x772   :  { %3551 = vmatmul.mubr.msk.f32.vlgmr.msra.gmra.mrb[12].mxu1 %vm292_vm5, %v778_v20 }
 0x773   :  { %3796 = vmatpush3.bf16.msra.mxu1 %v4330_v32  ;;  %3557 = vmatprep.mubr.msk.f32.mxu1 %vm4027_vm3, %v4028_v58 }
 0x774   :  { %3797 = vmatprep.subr.bf16.mxu1 %v4026_v3 }
 0x776   :  { %3558 = vmatmul.mubr.msk.f32.vlgmr.msra.gmra.mrb[14].mxu1 %vm292_vm5, %v853_v21 }
 0x777   :  { %3799 = vmatpush3.bf16.msra.mxu1 %v4268_v57  ;;  %3564 = vmatprep.mubr.msk.f32.mxu1 %vm4027_vm3, %v4028_v58 }
 0x778   :  { %3800 = vmatprep.subr.bf16.mxu1 %v4026_v3 }
 0x77a   :  { %3565 = vmatmul.mubr.msk.f32.vlgmr.msra.gmra.mrb[16].mxu1 %vm292_vm5, %v778_v20 }
 0x77b   :  { %3802 = vmatpush3.bf16.msra.mxu1 %v4315_v23  ;;  %3571 = vmatprep.mubr.msk.f32.mxu1 %vm4027_vm3, %v4028_v58 }
 0x77c   :  { %3803 = vmatprep.subr.bf16.mxu1 %v4026_v3 }
 0x845   :  { %v847_v22 = vpop.f32.mrb[12].mxu1 }
 0x846   :  { %v3552_v24 = vpop.f32.mrb[13].mxu1  ;;  %v848_v33 = vadd.f32 %v4359_v44, %v847_v22 }
 0x849   :  { %v922_v25 = vpop.f32.mrb[14].mxu1 }
 0x84a   :  { %v923_v26 = vadd.f32 %v4350_v36, %v922_v25  ;;  %v3559_v27 = vpop.f32.mrb[15].mxu1 }
 0x84c   :  { %934 = vrot.lane.b32.xlu1 %v923_v26, %s4029_s1  ;;  %v926_v34 = vadd.f32 %v923_v26, %v848_v33 }
 0x84d   :  { %v1018_v28 = vpop.f32.mrb[16].mxu1 }
 0x84e   :  { %v1019_v29 = vadd.f32 %v4300_v7, %v1018_v28  ;;  %v3566_v30 = vpop.f32.mrb[17].mxu1  ;;  %v3346_v35 = vmul.f32 -1.442695, %v926_v34 }
 0x850   :  { %v1023_v31 = vrot.slane %v1019_v29, 4  ;;  %3912 = vpow2.f32 %v3346_v35 }
 0x852   :  { %1032 = vrot.lane.b32.xlu0 %v1023_v31, %s4029_s1  ;;  %v1025_v37 = vadd.f32 %v1023_v31, %v4304_v11 }
 0x854   :  { %v3348_v38 = vmul.f32 -1.442695, %v1025_v37 }
 0x856   :  { %3914 = vpow2.f32 %v3348_v38 }
 0x85a   :  { %v3913_v39 = vpop.eup %3912 }
 0x85b   :  { %v930_v40 = vadd.f32 1.0, %v3913_v39 }
 0x85d   :  { %3916 = vrcp.f32 %v930_v40 }
 0x860   :  { %v3915_v41 = vpop.eup %3914 }
 0x861   :  { %v1029_v42 = vadd.f32 1.0, %v3915_v41 }
 0x863   :  { %3918 = vrcp.f32 %v1029_v42 }
 0x867   :  { %v3917_v43 = vpop.eup %3916 }
 0x868   :  { %v944_v56 = vsub.f32 1.0, %v3917_v43  ;;  %v950_v60 = vmul.f32 %v3917_v43, %v4368_v12 }
 0x86d   :  { %v3919_v47 = vpop.eup %3918 }
 0x86e   :  { %v1042_v0 = vsub.f32 1.0, %v3919_v47  ;;  %v1050_v2 = vmul.f32 %v3919_v47, %v1048_v63 }
 0x8be   :  { %v935_v45 = vpop.permute.xlu1 %934 }
 0x8bf   :  { %v937_v46 = vmul.f32 %v3917_v43, %v935_v45 }
 0x8c1   :  { %939 = vrot.lane.b32.xlu1 %v937_v46, %s4030_s22 }
 0x8c4   :  { %v1033_v48 = vpop.permute.xlu0 %1032 }
 0x8c5   :  { %v1035_v49 = vmul.f32 %v3919_v47, %v1033_v48 }
 0x8c7   :  { %1037 = vrot.lane.b32.xlu0 %v1035_v49, %s4030_s22 }
 0x933   :  { %v940_v50 = vpop.permute.xlu1 %939 }
 0x934   :  { %v942_v51 = vadd.f32 %v940_v50, %v848_v33 }
 0x936   :  { %3920 = vtanh.f32 %v942_v51 }
 0x939   :  { %v1038_v52 = vpop.permute.xlu0 %1037 }
 0x93a   :  { %v1040_v53 = vadd.f32 %v1038_v52, %v4304_v11 }
 0x93c   :  { %3922 = vtanh.f32 %v1040_v53 }
 0x940   :  { %v3921_v54 = vpop.eup %3920 }
 0x941   :  { %946 = vrot.lane.b32.xlu1 %v3921_v54, %s4031_s26 }
 0x946   :  { %v3923_v55 = vpop.eup %3922 }
 0x947   :  { %1044 = vrot.lane.b32.xlu0 %v3923_v55, %s4031_s26 }
 0x9b3   :  { %v947_v59 = vpop.permute.xlu1 %946 }
 0x9b4   :  { %v949_v61 = vmul.f32 %v947_v59, %v944_v56 }
 0x9b6   :  { %v4404_v62 = vadd.f32 %v950_v60, %v949_v61 }
 0x9b8   :  { %1129 = vrot.lane.b32.xlu1 %v4404_v62, %s4031_s26 }
 0x9b9   :  { %v1045_v1 = vpop.permute.xlu0 %1044 }
 0x9ba   :  { %v1047_v4 = vmul.f32 %v1045_v1, %v1042_v0 }
 0x9bc   :  { %v4409_v6 = vadd.f32 %v1050_v2, %v1047_v4 }
 0x9be   :  { %v1053_v8 = vrot.slane %v4409_v6, 4  ;;  %v1325_v52 = vrot.slane %v4409_v6, 6 }
 0x9c0   :  { %1054 = vrot.lane.b32.xlu0 %v1053_v8, %s4031_s26 }
 0xa2a   :  { %v1130_v10 = vpop.permute.xlu1 %1129 }
 0xa32   :  { %v1055_v9 = vpop.permute.xlu0 %1054 }
 0xa33   :  { %3572 = vmatmul.mubr.msk.f32.vlgmr.msra.gmra.mrb[18].mxu1 %vm292_vm5, %v1055_v9 }
 0xa34   :  { %3805 = vmatpush3.bf16.msra.mxu1 %v4330_v32  ;;  %3578 = vmatprep.mubr.msk.f32.mxu1 %vm4027_vm3, %v4028_v58 }
 0xa35   :  { %3806 = vmatprep.subr.bf16.mxu1 %v4026_v3 }
 0xa37   :  { %3579 = vmatmul.mubr.msk.f32.vlgmr.msra.gmra.mrb[20].mxu1 %vm292_vm5, %v1130_v10 }
 0xa38   :  { %3808 = vmatpush3.bf16.msra.mxu1 %v4268_v57  ;;  %3585 = vmatprep.mubr.msk.f32.mxu1 %vm4027_vm3, %v4028_v58 }
 0xa39   :  { %3809 = vmatprep.subr.bf16.mxu1 %v4026_v3 }
 0xa3b   :  { %3586 = vmatmul.mubr.msk.f32.vlgmr.msra.gmra.mrb[22].mxu1 %vm292_vm5, %v1055_v9 }
 0xa3c   :  { %3811 = vmatpush3.bf16.msra.mxu1 %v4315_v23  ;;  %3592 = vmatprep.mubr.msk.f32.mxu1 %vm4027_vm3, %v4028_v58 }
 0xa3d   :  { %3812 = vmatprep.subr.bf16.mxu1 %v4026_v3 }
 0xb06   :  { %v1124_v13 = vpop.f32.mrb[18].mxu1 }
 0xb07   :  { %v3573_v14 = vpop.f32.mrb[19].mxu1  ;;  %v1125_v22 = vadd.f32 %v4359_v44, %v1124_v13 }
 0xb0a   :  { %v1199_v15 = vpop.f32.mrb[20].mxu1 }
 0xb0b   :  { %v1200_v16 = vadd.f32 %v4350_v36, %v1199_v15  ;;  %v3580_v17 = vpop.f32.mrb[21].mxu1 }
 0xb0d   :  { %1211 = vrot.lane.b32.xlu1 %v1200_v16, %s4029_s1  ;;  %v1203_v24 = vadd.f32 %v1200_v16, %v1125_v22 }
 0xb0e   :  { %v1295_v18 = vpop.f32.mrb[22].mxu1 }
 0xb0f   :  { %v1296_v19 = vadd.f32 %v4300_v7, %v1295_v18  ;;  %v3587_v20 = vpop.f32.mrb[23].mxu1  ;;  %v3351_v25 = vmul.f32 -1.442695, %v1203_v24 }
 0xb11   :  { %v1300_v21 = vrot.slane %v1296_v19, 2  ;;  %3924 = vpow2.f32 %v3351_v25 }
 0xb13   :  { %1309 = vrot.lane.b32.xlu0 %v1300_v21, %s4029_s1  ;;  %v1302_v26 = vadd.f32 %v1300_v21, %v4304_v11 }
 0xb15   :  { %v3353_v27 = vmul.f32 -1.442695, %v1302_v26 }
 0xb17   :  { %3926 = vpow2.f32 %v3353_v27 }
 0xb1b   :  { %v3925_v28 = vpop.eup %3924 }
 0xb1c   :  { %v1207_v29 = vadd.f32 1.0, %v3925_v28 }
 0xb1e   :  { %3928 = vrcp.f32 %v1207_v29 }
 0xb21   :  { %v3927_v30 = vpop.eup %3926 }
 0xb22   :  { %v1306_v31 = vadd.f32 1.0, %v3927_v30 }
 0xb24   :  { %3930 = vrcp.f32 %v1306_v31 }
 0xb28   :  { %v3929_v33 = vpop.eup %3928 }
 0xb29   :  { %v1221_v47 = vsub.f32 1.0, %v3929_v33  ;;  %v1227_v49 = vmul.f32 %v3929_v33, %v4404_v62 }
 0xb2e   :  { %v3931_v37 = vpop.eup %3930 }
 0xb2f   :  { %v1327_v54 = vmul.f32 %v3931_v37, %v1325_v52 }
 0xb7f   :  { %v1212_v34 = vpop.permute.xlu1 %1211 }
 0xb80   :  { %v1214_v35 = vmul.f32 %v3929_v33, %v1212_v34 }
 0xb82   :  { %1216 = vrot.lane.b32.xlu1 %v1214_v35, %s4030_s22 }
 0xb85   :  { %v1310_v38 = vpop.permute.xlu0 %1309 }
 0xb86   :  { %v1312_v39 = vmul.f32 %v3931_v37, %v1310_v38 }
 0xb88   :  { %1314 = vrot.lane.b32.xlu0 %v1312_v39, %s4030_s22 }
 0xbf4   :  { %v1217_v40 = vpop.permute.xlu1 %1216 }
 0xbf5   :  { %v1219_v41 = vadd.f32 %v1217_v40, %v1125_v22 }
 0xbf7   :  { %3932 = vtanh.f32 %v1219_v41 }
 0xbfa   :  { %v1315_v42 = vpop.permute.xlu0 %1314 }
 0xbfb   :  { %v1317_v43 = vadd.f32 %v1315_v42, %v4304_v11  ;;  %v1319_v11 = vsub.f32 1.0, %v3931_v37 }
 0xbfd   :  { %3934 = vtanh.f32 %v1317_v43 }
 0xc01   :  { %v3933_v45 = vpop.eup %3932 }
 0xc02   :  { %1223 = vrot.lane.b32.xlu1 %v3933_v45, %s4031_s26 }
 0xc07   :  { %v3935_v46 = vpop.eup %3934 }
 0xc08   :  { %1321 = vrot.lane.b32.xlu0 %v3935_v46, %s4031_s26 }
 0xc74   :  { %v1224_v48 = vpop.permute.xlu1 %1223 }
 0xc75   :  { %v1226_v50 = vmul.f32 %v1224_v48, %v1221_v47 }
 0xc77   :  { %v4440_v51 = vadd.f32 %v1227_v49, %v1226_v50 }
 0xc79   :  { %1406 = vrot.lane.b32.xlu1 %v4440_v51, %s4031_s26 }
 0xc7a   :  { %v1322_v53 = vpop.permute.xlu0 %1321 }
 0xc7b   :  { %v1324_v55 = vmul.f32 %v1322_v53, %v1319_v11 }
 0xc7d   :  { %v1328_v56 = vadd.f32 %v1327_v54, %v1324_v55 }
 0xc7f   :  { %v1330_v59 = vrot.slane %v1328_v56, 6 }
 0xc81   :  { %1331 = vrot.lane.b32.xlu0 %v1330_v59, %s4031_s26 }
 0xceb   :  { %v1407_v61 = vpop.permute.xlu1 %1406 }
 0xcf3   :  { %v1332_v60 = vpop.permute.xlu0 %1331 }
 0xcf4   :  { %3593 = vmatmul.mubr.msk.f32.vlgmr.msra.gmra.mrb[24].mxu1 %vm292_vm5, %v1332_v60  ;;  %3607 = vmatmul.mubr.msk.f32.vlgmr.msra.gmra.mrb[6].mxu0 %vm292_vm5, %v1332_v60 }
 0xcf5   :  { %3814 = vmatpush3.bf16.msra.mxu1 %v4330_v32  ;;  %3599 = vmatprep.mubr.msk.f32.mxu1 %vm4027_vm3, %v4028_v58 }
 0xcf6   :  { %3818 = vmatprep.subr.bf16.mxu1 %v4026_v3  ;;  %3823 = vmatpush3.bf16.msra.mxu0 %v4330_v32 }
 0xcf7   :  { %3620 = vmatprep.mubr.msk.f32.mxu0 %vm4027_vm3, %v4028_v58  ;;  %3827 = vmatprep.subr.bf16.mxu0 %v4026_v3 }
 0xcf8   :  { %3600 = vmatmul.mubr.msk.f32.vlgmr.msra.gmra.mrb[26].mxu1 %vm292_vm5, %v1407_v61 }
 0xcf9   :  { %3820 = vmatpush3.bf16.msra.mxu1 %v4315_v23  ;;  %3613 = vmatprep.mubr.msk.f32.mxu1 %vm4027_vm3, %v4028_v58 }
 0xcfa   :  { %3824 = vmatprep.subr.bf16.mxu1 %v4026_v3 }
 0xdc7   :  { %v1401_v63 = vpop.f32.mrb[24].mxu1  ;;  %v1572_v0 = vpop.f32.mrb[6].mxu0 }
 0xdc8   :  { %v1573_v1 = vadd.f32 %v4300_v7, %v1572_v0  ;;  %v3594_v2 = vpop.f32.mrb[25].mxu1  ;;  %v3608_v4 = vpop.f32.mrb[7].mxu0  ;;  %v1402_v13 = vadd.f32 %v4359_v44, %v1401_v63 }
 0xdca   :  { %1584 = vrot.lane.b32.xlu1 %v1573_v1, %s4029_s1  ;;  %v1576_v10 = vadd.f32 %v1573_v1, %v4295_v5 }
 0xdcb   :  { %v1476_v6 = vpop.f32.mrb[26].mxu1 }
 0xdcc   :  { %v1477_v8 = vadd.f32 %v4350_v36, %v1476_v6  ;;  %v3601_v9 = vpop.f32.mrb[27].mxu1  ;;  %v3358_v14 = vmul.f32 -1.442695, %v1576_v10 }
 0xdce   :  { %1488 = vrot.lane.b32.xlu0 %v1477_v8, %s4029_s1  ;;  %v1480_v15 = vadd.f32 %v1477_v8, %v1402_v13  ;;  %3936 = vpow2.f32 %v3358_v14 }
 0xdd0   :  { %v3356_v16 = vmul.f32 -1.442695, %v1480_v15 }
 0xdd2   :  { %3938 = vpow2.f32 %v3356_v16 }
 0xdd8   :  { %v3937_v17 = vpop.eup %3936 }
 0xdd9   :  { %v1580_v18 = vadd.f32 1.0, %v3937_v17 }
 0xddb   :  { %3940 = vrcp.f32 %v1580_v18 }
 0xddc   :  { %v3939_v19 = vpop.eup %3938 }
 0xddd   :  { %v1484_v20 = vadd.f32 1.0, %v3939_v19 }
 0xddf   :  { %3942 = vrcp.f32 %v1484_v20 }
 0xde5   :  { %v3941_v21 = vpop.eup %3940 }
 0xde6   :  { %v1594_v35 = vsub.f32 1.0, %v3941_v21  ;;  %v1601_v38 = vmul.f32 %v3941_v21, %v1330_v59 }
 0xde9   :  { %v3943_v25 = vpop.eup %3942 }
 0xdea   :  { %v1498_v41 = vsub.f32 1.0, %v3943_v25  ;;  %v1504_v43 = vmul.f32 %v3943_v25, %v4440_v51 }
 0xe3c   :  { %v1585_v22 = vpop.permute.xlu1 %1584 }
 0xe3d   :  { %v1587_v24 = vmul.f32 %v3941_v21, %v1585_v22 }
 0xe3f   :  { %1589 = vrot.lane.b32.xlu1 %v1587_v24, %s4030_s22 }
 0xe40   :  { %v1489_v26 = vpop.permute.xlu0 %1488 }
 0xe41   :  { %v1491_v27 = vmul.f32 %v3943_v25, %v1489_v26 }
 0xe43   :  { %1493 = vrot.lane.b32.xlu0 %v1491_v27, %s4030_s22 }
 0xeb1   :  { %v1590_v28 = vpop.permute.xlu1 %1589 }
 0xeb2   :  { %v1592_v29 = vadd.f32 %v1590_v28, %v4295_v5 }
 0xeb4   :  { %3944 = vtanh.f32 %v1592_v29 }
 0xeb5   :  { %v1494_v30 = vpop.permute.xlu0 %1493 }
 0xeb6   :  { %v1496_v31 = vadd.f32 %v1494_v30, %v1402_v13 }
 0xeb8   :  { %3946 = vtanh.f32 %v1496_v31 }
 0xebe   :  { %v3945_v33 = vpop.eup %3944 }
 0xebf   :  { %1596 = vrot.lane.b32.xlu1 %v3945_v33, %s4031_s26 }
 0xec2   :  { %v3947_v34 = vpop.eup %3946 }
 0xec3   :  { %1500 = vrot.lane.b32.xlu0 %v3947_v34, %s4031_s26 }
 0xf31   :  { %v1597_v37 = vpop.permute.xlu1 %1596 }
 0xf32   :  { %v1599_v39 = vmul.f32 %v1597_v37, %v1594_v35 }
 0xf34   :  { %v4472_v40 = vadd.f32 %v1601_v38, %v1599_v39 }
 0xf35   :  { %v1501_v42 = vpop.permute.xlu0 %1500 }
 0xf36   :  { %v1503_v45 = vmul.f32 %v1501_v42, %v1498_v41  ;;  %1604 = vrot.lane.b32.xlu1 %v4472_v40, %s4031_s26  ;;  %v1875_v26 = vrot.slane %v4472_v40, 6 }
 0xf38   :  { %v4477_v46 = vadd.f32 %v1504_v43, %v1503_v45 }
 0xf3a   :  { %1679 = vrot.lane.b32.xlu0 %v4477_v46, %s4031_s26 }
 0xfa8   :  { %v1605_v47 = vpop.permute.xlu1 %1604 }
 0xfa9   :  { %3614 = vmatmul.mubr.msk.f32.vlgmr.msra.gmra.mrb[28].mxu1 %vm292_vm5, %v1605_v47 }
 0xfaa   :  { %3826 = vmatpush3.bf16.msra.mxu1 %v4268_v57  ;;  %3627 = vmatprep.mubr.msk.f32.mxu1 %vm4027_vm3, %v4028_v58 }
 0xfab   :  { %3830 = vmatprep.subr.bf16.mxu1 %v4026_v3 }
 0xfac   :  { %v1680_v48 = vpop.permute.xlu0 %1679 }
 0xfad   :  { %3621 = vmatmul.mubr.msk.f32.vlgmr.msra.gmra.mrb[8].mxu0 %vm292_vm5, %v1680_v48  ;;  %3628 = vmatmul.mubr.msk.f32.vlgmr.msra.gmra.mrb[30].mxu1 %vm292_vm5, %v1605_v47 }
 0xfae   :  { %3832 = vmatpush3.bf16.msra.mxu1 %v4330_v32  ;;  %3641 = vmatprep.mubr.msk.f32.mxu1 %vm4027_vm3, %v4028_v58 }
 0xfaf   :  { %3829 = vmatpush3.bf16.msra.mxu0 %v4315_v23  ;;  %3634 = vmatprep.mubr.msk.f32.mxu0 %vm4027_vm3, %v4028_v58 }
 0xfb0   :  { %3833 = vmatprep.subr.bf16.mxu0 %v4026_v3  ;;  %3836 = vmatprep.subr.bf16.mxu1 %v4026_v3 }
0x107c   :  { %v1674_v49 = vpop.f32.mrb[28].mxu1 }
0x107d   :  { %v3615_v50 = vpop.f32.mrb[29].mxu1  ;;  %v1675_v60 = vadd.f32 %v4359_v44, %v1674_v49 }
0x1080   :  { %v1749_v52 = vpop.f32.mrb[8].mxu0  ;;  %v1845_v11 = vpop.f32.mrb[30].mxu1 }
0x1081   :  { %v1750_v53 = vadd.f32 %v4350_v36, %v1749_v52  ;;  %v1846_v54 = vadd.f32 %v4300_v7, %v1845_v11  ;;  %v3622_v55 = vpop.f32.mrb[9].mxu0  ;;  %v3629_v56 = vpop.f32.mrb[31].mxu1 }
0x1083   :  { %v1850_v59 = vrot.slane %v1846_v54, 6  ;;  %1761 = vrot.lane.b32.xlu0 %v1750_v53, %s4029_s1  ;;  %v1753_v61 = vadd.f32 %v1750_v53, %v1675_v60 }
0x1085   :  { %1859 = vrot.lane.b32.xlu1 %v1850_v59, %s4029_s1  ;;  %v1852_v63 = vadd.f32 %v1850_v59, %v4295_v5  ;;  %v3361_v0 = vmul.f32 -1.442695, %v1753_v61 }
0x1087   :  { %v3363_v1 = vmul.f32 -1.442695, %v1852_v63  ;;  %3948 = vpow2.f32 %v3361_v0 }
0x1089   :  { %3950 = vpow2.f32 %v3363_v1 }
0x1091   :  { %v3949_v2 = vpop.eup %3948 }
0x1092   :  { %v1757_v6 = vadd.f32 1.0, %v3949_v2 }
0x1093   :  { %v3951_v4 = vpop.eup %3950 }
0x1094   :  { %v1856_v8 = vadd.f32 1.0, %v3951_v4  ;;  %3952 = vrcp.f32 %v1757_v6 }
0x1096   :  { %3954 = vrcp.f32 %v1856_v8 }
0x109e   :  { %v3953_v9 = vpop.eup %3952 }
0x109f   :  { %v1771_v24 = vsub.f32 1.0, %v3953_v9  ;;  %v1777_v27 = vmul.f32 %v3953_v9, %v4477_v46 }
0x10a0   :  { %v3955_v14 = vpop.eup %3954 }
0x10a1   :  { %v1869_v29 = vsub.f32 1.0, %v3955_v14  ;;  %v1877_v34 = vmul.f32 %v3955_v14, %v1875_v26 }
0x10f5   :  { %v1762_v10 = vpop.permute.xlu0 %1761 }
0x10f6   :  { %v1764_v13 = vmul.f32 %v3953_v9, %v1762_v10 }
0x10f7   :  { %v1860_v15 = vpop.permute.xlu1 %1859 }
0x10f8   :  { %v1862_v16 = vmul.f32 %v3955_v14, %v1860_v15  ;;  %1766 = vrot.lane.b32.xlu0 %v1764_v13, %s4030_s22 }
0x10fa   :  { %1864 = vrot.lane.b32.xlu1 %v1862_v16, %s4030_s22 }
0x116a   :  { %v1767_v17 = vpop.permute.xlu0 %1766 }
0x116b   :  { %v1769_v18 = vadd.f32 %v1767_v17, %v1675_v60 }
0x116c   :  { %v1865_v19 = vpop.permute.xlu1 %1864 }
0x116d   :  { %3956 = vtanh.f32 %v1769_v18  ;;  %v1867_v20 = vadd.f32 %v1865_v19, %v4295_v5 }
0x116f   :  { %3958 = vtanh.f32 %v1867_v20 }
0x1177   :  { %v3957_v21 = vpop.eup %3956 }
0x1178   :  { %1773 = vrot.lane.b32.xlu0 %v3957_v21, %s4031_s26 }
0x1179   :  { %v3959_v22 = vpop.eup %3958 }
0x117a   :  { %1871 = vrot.lane.b32.xlu1 %v3959_v22, %s4031_s26 }
0x11ea   :  { %v1774_v25 = vpop.permute.xlu0 %1773 }
0x11eb   :  { %v1776_v28 = vmul.f32 %v1774_v25, %v1771_v24 }
0x11ec   :  { %v1872_v30 = vpop.permute.xlu1 %1871 }
0x11ed   :  { %v4509_v31 = vadd.f32 %v1777_v27, %v1776_v28  ;;  %v1874_v33 = vmul.f32 %v1872_v30, %v1869_v29 }
0x11ef   :  { %v4511_v35 = vadd.f32 %v1877_v34, %v1874_v33  ;;  %1956 = vrot.lane.b32.xlu0 %v4509_v31, %s4031_s26 }
0x11f1   :  { %v1880_v37 = vrot.slane %v4511_v35, 2  ;;  %v2152_v21 = vrot.slane %v4511_v35, 6 }
0x11f3   :  { %1881 = vrot.lane.b32.xlu1 %v1880_v37, %s4031_s26 }
0x1261   :  { %v1957_v38 = vpop.permute.xlu0 %1956 }
0x1262   :  { %3642 = vmatmul.mubr.msk.f32.vlgmr.msra.gmra.mrb[32].mxu1 %vm292_vm5, %v1957_v38 }
0x1263   :  { %3838 = vmatpush3.bf16.msra.mxu1 %v4315_v23  ;;  %3655 = vmatprep.mubr.msk.f32.mxu1 %vm4027_vm3, %v4028_v58 }
0x1264   :  { %3842 = vmatprep.subr.bf16.mxu1 %v4026_v3 }
0x1265   :  { %v1882_v39 = vpop.permute.xlu1 %1881 }
0x1266   :  { %3635 = vmatmul.mubr.msk.f32.vlgmr.msra.gmra.mrb[10].mxu0 %vm292_vm5, %v1882_v39 }
0x1267   :  { %3835 = vmatpush3.bf16.msra.mxu0 %v4268_v57  ;;  %3648 = vmatprep.mubr.msk.f32.mxu0 %vm4027_vm3, %v4028_v58 }
0x1268   :  { %3839 = vmatprep.subr.bf16.mxu0 %v4026_v3 }
0x126a   :  { %3649 = vmatmul.mubr.msk.f32.vlgmr.msra.gmra.mrb[12].mxu0 %vm292_vm5, %v1882_v39 }
0x126b   :  { %3841 = vmatpush3.bf16.msra.mxu0 %v4330_v32  ;;  %3662 = vmatprep.mubr.msk.f32.mxu0 %vm4027_vm3, %v4028_v58 }
0x126c   :  { %3845 = vmatprep.subr.bf16.mxu0 %v4026_v3 }
0x1335   :  { %v2026_v40 = vpop.f32.mrb[32].mxu1 }
0x1336   :  { %v2027_v41 = vadd.f32 %v4350_v36, %v2026_v40  ;;  %v3643_v42 = vpop.f32.mrb[33].mxu1 }
0x1338   :  { %2038 = vrot.lane.b32.xlu0 %v2027_v41, %s4029_s1 }
0x1339   :  { %v1951_v43 = vpop.f32.mrb[10].mxu0 }
0x133a   :  { %v3636_v45 = vpop.f32.mrb[11].mxu0  ;;  %v1952_v52 = vadd.f32 %v4359_v44, %v1951_v43 }
0x133c   :  { %v2030_v11 = vadd.f32 %v2027_v41, %v1952_v52 }
0x133d   :  { %v2122_v47 = vpop.f32.mrb[12].mxu0 }
0x133e   :  { %v2123_v48 = vadd.f32 %v4300_v7, %v2122_v47  ;;  %v3650_v49 = vpop.f32.mrb[13].mxu0  ;;  %v3366_v53 = vmul.f32 -1.442695, %v2030_v11 }
0x1340   :  { %v2127_v50 = vrot.slane %v2123_v48, 4  ;;  %3960 = vpow2.f32 %v3366_v53 }
0x1342   :  { %2136 = vrot.lane.b32.xlu1 %v2127_v50, %s4029_s1  ;;  %v2129_v54 = vadd.f32 %v2127_v50, %v4295_v5 }
0x1344   :  { %v3368_v55 = vmul.f32 -1.442695, %v2129_v54 }
0x1346   :  { %3962 = vpow2.f32 %v3368_v55 }
0x134a   :  { %v3961_v56 = vpop.eup %3960 }
0x134b   :  { %v2034_v59 = vadd.f32 1.0, %v3961_v56 }
0x134d   :  { %3964 = vrcp.f32 %v2034_v59 }
0x1350   :  { %v3963_v60 = vpop.eup %3962 }
0x1351   :  { %v2133_v61 = vadd.f32 1.0, %v3963_v60 }
0x1353   :  { %3966 = vrcp.f32 %v2133_v61 }
0x1357   :  { %v3965_v63 = vpop.eup %3964 }
0x1358   :  { %v2048_v16 = vsub.f32 1.0, %v3965_v63  ;;  %v2054_v18 = vmul.f32 %v3965_v63, %v4509_v31 }
0x135d   :  { %v3967_v2 = vpop.eup %3966 }
0x135e   :  { %v2146_v22 = vsub.f32 1.0, %v3967_v2  ;;  %v2154_v25 = vmul.f32 %v3967_v2, %v2152_v21 }
0x13aa   :  { %v2039_v0 = vpop.permute.xlu0 %2038 }
0x13ab   :  { %v2041_v1 = vmul.f32 %v3965_v63, %v2039_v0 }
0x13ad   :  { %2043 = vrot.lane.b32.xlu0 %v2041_v1, %s4030_s22 }
0x13b4   :  { %v2137_v4 = vpop.permute.xlu1 %2136 }
0x13b5   :  { %v2139_v6 = vmul.f32 %v3967_v2, %v2137_v4 }
0x13b7   :  { %2141 = vrot.lane.b32.xlu1 %v2139_v6, %s4030_s22 }
0x141f   :  { %v2044_v8 = vpop.permute.xlu0 %2043 }
0x1420   :  { %v2046_v9 = vadd.f32 %v2044_v8, %v1952_v52 }
0x1422   :  { %3968 = vtanh.f32 %v2046_v9 }
0x1429   :  { %v2142_v10 = vpop.permute.xlu1 %2141 }
0x142a   :  { %v2144_v13 = vadd.f32 %v2142_v10, %v4295_v5 }
0x142c   :  { %v3969_v14 = vpop.eup %3968  ;;  %3970 = vtanh.f32 %v2144_v13 }
0x142d   :  { %2050 = vrot.lane.b32.xlu0 %v3969_v14, %s4031_s26 }
0x1436   :  { %v3971_v15 = vpop.eup %3970 }
0x1437   :  { %2148 = vrot.lane.b32.xlu1 %v3971_v15, %s4031_s26 }
0x149f   :  { %v2051_v17 = vpop.permute.xlu0 %2050 }
0x14a0   :  { %v2053_v19 = vmul.f32 %v2051_v17, %v2048_v16 }
0x14a2   :  { %v4544_v20 = vadd.f32 %v2054_v18, %v2053_v19 }
0x14a4   :  { %2233 = vrot.lane.b32.xlu0 %v4544_v20, %s4031_s26 }
0x14a9   :  { %v2149_v24 = vpop.permute.xlu1 %2148 }
0x14aa   :  { %v2151_v26 = vmul.f32 %v2149_v24, %v2146_v22 }
0x14ac   :  { %v4549_v27 = vadd.f32 %v2154_v25, %v2151_v26 }
0x14ae   :  { %v2157_v28 = vrot.slane %v4549_v27, 4  ;;  %v2429_v9 = vrot.slane %v4549_v27, 6 }
0x14b0   :  { %2158 = vrot.lane.b32.xlu1 %v2157_v28, %s4031_s26 }
0x1516   :  { %v2234_v29 = vpop.permute.xlu0 %2233 }
0x1517   :  { %3663 = vmatmul.mubr.msk.f32.vlgmr.msra.gmra.mrb[14].mxu0 %vm292_vm5, %v2234_v29 }
0x1518   :  { %3847 = vmatpush3.bf16.msra.mxu0 %v4315_v23  ;;  %3676 = vmatprep.mubr.msk.f32.mxu0 %vm4027_vm3, %v4028_v58 }
0x1522   :  { %v2159_v30 = vpop.permute.xlu1 %2158 }
0x1523   :  { %3656 = vmatmul.mubr.msk.f32.vlgmr.msra.gmra.mrb[34].mxu1 %vm292_vm5, %v2159_v30 }
0x1524   :  { %3844 = vmatpush3.bf16.msra.mxu1 %v4268_v57  ;;  %3669 = vmatprep.mubr.msk.f32.mxu1 %vm4027_vm3, %v4028_v58 }
0x1525   :  { %3848 = vmatprep.subr.bf16.mxu1 %v4026_v3 }
0x1527   :  { %3670 = vmatmul.mubr.msk.f32.vlgmr.msra.gmra.mrb[36].mxu1 %vm292_vm5, %v2159_v30 }
0x1528   :  { %3850 = vmatpush3.bf16.msra.mxu1 %v4330_v32  ;;  %3683 = vmatprep.mubr.msk.f32.mxu1 %vm4027_vm3, %v4028_v58 }
0x15ea   :  { %v2303_v23 = vpop.f32.mrb[14].mxu0 }
0x15eb   :  { %v2304_v33 = vadd.f32 %v4350_v36, %v2303_v23  ;;  %v3664_v34 = vpop.f32.mrb[15].mxu0 }
0x15ed   :  { %2315 = vrot.lane.b32.xlu0 %v2304_v33, %s4029_s1 }
0x15f6   :  { %v2228_v35 = vpop.f32.mrb[34].mxu1 }
0x15f7   :  { %v3657_v57 = vpop.f32.mrb[35].mxu1  ;;  %v2229_v32 = vadd.f32 %v4359_v44, %v2228_v35 }
0x15f9   :  { %v2307_v41 = vadd.f32 %v2304_v33, %v2229_v32 }
0x15fa   :  { %v2399_v37 = vpop.f32.mrb[36].mxu1 }
0x15fb   :  { %v2400_v38 = vadd.f32 %v4300_v7, %v2399_v37  ;;  %v3671_v39 = vpop.f32.mrb[37].mxu1  ;;  %v3371_v42 = vmul.f32 -1.442695, %v2307_v41  ;;  %v2612_v41 = vrot.slane %v4440_v51, 4  ;;  %v2722_v51 = vld [vmem:[%s4697_s10] sm:$0xff] }
0x15fc   :  { %v2616_v39 = vrot.slane %v4544_v20, 6 }
0x15fd   :  { %v2404_v40 = vrot.slane %v2400_v38, 2  ;;  %3972 = vpow2.f32 %v3371_v42 }
0x15ff   :  { %2413 = vrot.lane.b32.xlu1 %v2404_v40, %s4029_s1  ;;  %v2406_v45 = vadd.f32 %v2404_v40, %v4295_v5 }
0x1601   :  { %v3373_v48 = vmul.f32 -1.442695, %v2406_v45  ;;  %v2614_v45 = vrot.slane %v4477_v46, 2 }
0x1607   :  { %v3973_v43 = vpop.eup %3972 }
0x1608   :  { %v2311_v47 = vadd.f32 1.0, %v3973_v43  ;;  %v2631_v43 = vld [vmem:[%s4721_s18] sm:$0xff] }
0x160a   :  { %3974 = vrcp.f32 %v2311_v47 }
0x160b   :  { %3976 = vpow2.f32 %v3373_v48 }
0x1614   :  { %v3975_v49 = vpop.eup %3974 }
0x1615   :  { %v3977_v52 = vpop.eup %3976  ;;  %v2325_v1 = vsub.f32 1.0, %v3975_v49  ;;  %v2331_v4 = vmul.f32 %v3975_v49, %v4544_v20  ;;  %v2628_v20 = vsel %vm2623_vm6, %v4509_v31, %v2616_v39 }
0x1616   :  { %v2410_v11 = vadd.f32 1.0, %v3977_v52 }
0x1618   :  { %3978 = vrcp.f32 %v2410_v11 }
0x1622   :  { %v3979_v53 = vpop.eup %3978 }
0x1623   :  { %v2423_v10 = vsub.f32 1.0, %v3979_v53  ;;  %v2431_v14 = vmul.f32 %v3979_v53, %v2429_v9 }
0x165f   :  { %v2316_v50 = vpop.permute.xlu0 %2315 }
0x1660   :  { %v2318_v7 = vmul.f32 %v3975_v49, %v2316_v50  ;;  %v2723_v49 = vld [vmem:[%s4697_s10 + $0x8] sm:$0xff] }
0x1661   :  { %v3855_v52 = vpack.c.bf16 %v2723_v49, %v2722_v51  ;;  %v3115_v51 = vld [vmem:[%s4692_s5] sm:$0xff] }
0x1662   :  { %2320 = vrot.lane.b32.xlu0 %v2318_v7, %s4030_s22  ;;  %v3203_v49 = vld [vmem:[%s4703_s16] sm:$0xff] }
0x1663   :  { %3856 = vmatprep.subr.bf16.mxu1 %v3855_v52 }
0x1671   :  { %v2414_v54 = vpop.permute.xlu1 %2413 }
0x1672   :  { %v2416_v55 = vmul.f32 %v3979_v53, %v2414_v54 }
0x1674   :  { %2418 = vrot.lane.b32.xlu1 %v2416_v55, %s4030_s22 }
0x16d4   :  { %v2321_v56 = vpop.permute.xlu0 %2320 }
0x16d5   :  { %v2323_v59 = vadd.f32 %v2321_v56, %v2229_v32  ;;  %v2632_v56 = vld [vmem:[%s4721_s18 + $0x8] sm:$0xff] }
0x16d7   :  { %3980 = vtanh.f32 %v2323_v59  ;;  %v2909_v59 = vld [vmem:[%s4700_s13] sm:$0xff] }
0x16e1   :  { %v3981_v60 = vpop.eup %3980 }
0x16e2   :  { %2327 = vrot.lane.b32.xlu0 %v3981_v60, %s4031_s26  ;;  %v2910_v60 = vld [vmem:[%s4700_s13 + $0x8] sm:$0xff] }
0x16e6   :  { %v2419_v61 = vpop.permute.xlu1 %2418 }
0x16e7   :  { %v2421_v63 = vadd.f32 %v2419_v61, %v4295_v5 }
0x16e9   :  { %3982 = vtanh.f32 %v2421_v63  ;;  %v3866_v63 = vpack.c.bf16 %v2910_v60, %v2909_v59 }
0x16f3   :  { %v3983_v0 = vpop.eup %3982 }
0x16f4   :  { %2425 = vrot.lane.b32.xlu1 %v3983_v0, %s4031_s26 }
0x1754   :  { %v2328_v2 = vpop.permute.xlu0 %2327 }
0x1755   :  { %v2330_v6 = vmul.f32 %v2328_v2, %v2325_v1  ;;  %v2815_v1 = vld [vmem:[%s4699_s12] sm:$0xff]  ;;  %v2816_v2 = vld [vmem:[%s4699_s12 + $0x8] sm:$0x1] }
0x1757   :  { %v2332_v8 = vadd.f32 %v2331_v4, %v2330_v6  ;;  %v3859_v4 = vpack.c.bf16 %v2816_v2, %v2815_v1  ;;  %v3379_v6 = vld [vmem:[%s4698_s11] ss:$0 sm:$0xff] }
0x1759   :  { %2510 = vrot.lane.b32.xlu0 %v2332_v8, %s4031_s26  ;;  %v2618_v42 = vrot.slane %v2332_v8, 4 }
0x175b   :  { %v2629_v46 = vsel %vm199_vm2, %v2628_v20, %v2618_v42 }
0x1766   :  { %v2426_v13 = vpop.permute.xlu1 %2425 }
0x1767   :  { %v2428_v15 = vmul.f32 %v2426_v13, %v2423_v10 }
0x1769   :  { %v2432_v16 = vadd.f32 %v2431_v14, %v2428_v15  ;;  %v3386_v14 = vld [vmem:[%s4702_s15] ss:$0 sm:$0xff] }
0x176b   :  { %v2434_v5 = vrot.slane %v2432_v16, 6 }
0x176d   :  { %2435 = vrot.lane.b32.xlu1 %v2434_v5, %s4031_s26  ;;  %v3382_v5 = vld [vmem:[%s4701_s14] ss:$0 sm:$0xff] }
0x17cb   :  { %v2511_v17 = vpop.permute.xlu0 %2510 }
0x17cc   :  { %3684 = vmatmul.mubr.msk.f32.vlgmr.msra.gmra.mrb[38].mxu1 %vm292_vm5, %v2511_v17 }
0x17cd   :  { %3858 = vmatpush3.bf16.msra.mxu1 %v3855_v52 }
0x17ce   :  { %3865 = vmatprep.subr.bf16.mxu1 %v4026_v3 }
0x17df   :  { %v2436_v18 = vpop.permute.xlu1 %2435 }
0x17e0   :  { %3677 = vmatmul.mubr.msk.f32.vlgmr.msra.gmra.mrb[16].mxu0 %vm292_vm5, %v2436_v18 }
0x17e1   :  { %3690 = vmatprep.mubr.msk.f32.mxu0 %vm292_vm5, %v2631_v43 }
0x189f   :  { %v2580_v19 = vpop.f32.mrb[38].mxu1 }
0x18a0   :  { %v2581_v21 = vadd.f32 %v4350_v36, %v2580_v19  ;;  %v3685_v22 = vpop.f32.mrb[39].mxu1 }
0x18a2   :  { %2592 = vrot.lane.b32.xlu0 %v2581_v21, %s4029_s1 }
0x18b3   :  { %v2505_v24 = vpop.f32.mrb[16].mxu0 }
0x18b4   :  { %v3678_v25 = vpop.f32.mrb[17].mxu0  ;;  %v2506_v26 = vadd.f32 %v4359_v44, %v2505_v24  ;;  %v2610_v44 = vrot.slane %v4404_v62, 6 }
0x18b6   :  { %v2584_v27 = vadd.f32 %v2581_v21, %v2506_v26  ;;  %v2624_v62 = vsel %vm2623_vm6, %v4368_v12, %v2610_v44 }
0x18b7   :  { %v2625_v50 = vsel %vm199_vm2, %v2624_v62, %v2612_v41 }
0x18b8   :  { %v3376_v28 = vmul.f32 -1.442695, %v2584_v27  ;;  %v2627_v7 = vsel %vm2626_vm7, %v2625_v50, %v2614_v45  ;;  %v3204_v50 = vld [vmem:[%s4703_s16 + $0x8] sm:$0xff]  ;;  %s4033_s16 = smov [#allocation2]  }
0x18b9   :  { %v3875_v52 = vpack.c.bf16 %v3204_v50, %v3203_v49  ;;  %s3303_s24 = sshll.u32 %s4033_s16, 4  ;;  %s3304_s24 = int_to_ptr.vmem [resolvable:$true] %s3303_s24 }
0x18ba   :  { %3984 = vpow2.f32 %v3376_v28  ;;  %p4007_p1 = scmp.lt.s32.totalorder %s3304_s24, %s3304_s24 }
0x18c4   :  { %v3985_v29 = vpop.eup %3984 }
0x18c5   :  { %v2588_v30 = vadd.f32 1.0, %v3985_v29 }
0x18c7   :  { %3986 = vrcp.f32 %v2588_v30 }
0x18d1   :  { %v3987_v23 = vpop.eup %3986 }
0x18d2   :  { %v2602_v37 = vsub.f32 1.0, %v3987_v23  ;;  %v2608_v40 = vmul.f32 %v3987_v23, %v2332_v8 }
0x1914   :  { %v2593_v33 = vpop.permute.xlu0 %2592 }
0x1915   :  { %v2595_v34 = vmul.f32 %v3987_v23, %v2593_v33 }
0x1917   :  { %2597 = vrot.lane.b32.xlu1 %v2595_v34, %s4030_s22 }
0x1989   :  { %v2598_v35 = vpop.permute.xlu1 %2597 }
0x198a   :  { %v2600_v36 = vadd.f32 %v2598_v35, %v2506_v26 }
0x198c   :  { %3988 = vtanh.f32 %v2600_v36 }
0x1996   :  { %v3989_v57 = vpop.eup %3988 }
0x1997   :  { %2604 = vrot.lane.b32.xlu0 %v3989_v57, %s4031_s26 }
0x1a09   :  { %v2605_v38 = vpop.permute.xlu0 %2604 }
0x1a0a   :  { %v2607_v32 = vmul.f32 %v2605_v38, %v2602_v37 }
0x1a0c   :  { %v2609_v47 = vadd.f32 %v2608_v40, %v2607_v32 }
0x1a0e   :  { %v2621_v48 = vrot.slane %v2609_v47, 2 }
0x1a10   :  { %v2630_v11 = vsel %vm2626_vm7, %v2629_v46, %v2621_v48 }
0x1a11   :  { %v3889_v53 = vpack.i.bf16 %v2630_v11, %v2627_v7 }
0x1a13   :  { %3890 = vrot.lane.b32.xlu1 %v3889_v53, %s4031_s26 }
0x1a85   :  { %v3891_v12 = vpop.permute.xlu1 %3890 }
0x1a86   :  { %v3893_v31 = vunpack.i.h.bf16 %v3891_v12  ;;  %v3892_v54 = vunpack.i.l.bf16 %v3891_v12 }
0x1a88   :  { %v3851_v55 = vpack.c.bf16 %v3893_v31, %v3892_v54 }
0x1a8a   :  { %3852 = vmatprep.subr.bf16.mxu0 %v3851_v55 }
0x1a8b   :  { %3854 = vmatpush3.bf16.msra.mxu0 %v3851_v55  ;;  %v3116_v55 = vld [vmem:[%s4692_s5 + $0x8] sm:$0xff] }
0x1a8c   :  { %3861 = vmatprep.subr.msk.bf16.mxu0 %vm3860_vm10, %v3859_v4 }
0x1a8e   :  { %3691 = vmatmul.mubr.msk.f32.vlgmr.msra.gmra.mrb[18].mxu0 %vm292_vm5, %v2632_v56 }
0x1a8f   :  { %3864 = vmatpush3.bf16.msk.msra.mxu0 %vm3860_vm10, %v3859_v4 }
0x1a90   :  { %3868 = vmatprep.subr.bf16.mxu0 %v4026_v3 }
0x1b61   :  { %v3692_v61 = vpop.f32.mrb[18].mxu0 }
0x1b62   :  { %v2713_v0 = vpop.f32.mrb[19].mxu0 }
0x1b63   :  { %3697 = vmatprep.mubr.msk.f32.mxu1 %vm292_vm5, %v2713_v0 }
0x1b64   :  { %3698 = vmatmul.mubr.msk.f32.vlgmr.msra.gmra.mrb[40].mxu1 %vm292_vm5, %v3692_v61 }
0x1b65   :  { %3867 = vmatpush3.bf16.msra.mxu1 %v3866_v63  ;;  %3711 = vmatprep.mubr.msk.f32.mxu1 %vm4027_vm3, %v4028_v58 }
0x1b68   :  { %3712 = vmatmul.mubr.f32.vlgmr.msra.gmra.mrb[42].mxu1 %v4028_v58 }
0x1b69   :  { %3725 = vmatprep.mubr.msk.f32.mxu1 %vm292_vm5, %v3115_v51 }
0x1c37   :  { %v3699_v8 = vpop.f32.mrb[40].mxu1 }
0x1c38   :  { %v2809_v9 = vadd.f32 %v3699_v8, %v3379_v6  ;;  %v2803_v10 = vpop.f32.mrb[41].mxu1 }
0x1c39   :  { %v2804_v13 = vadd.f32 %v3379_v6, %v2803_v10 }
0x1c3a   :  { %2814 = vst.msk [vmem:[#allocation2 + $0x8] sm:$0xff] %vm2812_vm11, %v2809_v9 }
0x1c3b   :  { %2813 = vst.msk [vmem:[#allocation2] sm:$0xff] %vm2812_vm11, %v2804_v13  ;;  %3704 = vmatprep.mubr.msk.f32.mxu0 %vm2812_vm11, %v2804_v13  ;;  %v2984_v15 = vpop.f32.mrb[42].mxu1 }
0x1c3c   :  { %3705 = vmatmul.mubr.msk.f32.vlgmr.msra.gmra.mrb[20].mxu0 %vm2812_vm11, %v2809_v9  ;;  %v2985_v16 = vadd.f32 %v3386_v14, %v2984_v15  ;;  %v3713_v3 = vpop.f32.mrb[43].mxu1 }
0x1c3d   :  { %3870 = vmatpush3.bf16.msra.mxu0 %v3866_v63  ;;  %3718 = vmatprep.mubr.msk.f32.mxu0 %vm4027_vm3, %v4028_v58 }
0x1c3e   :  { %2996 = vrot.lane.b32.xlu0 %v2985_v16, %s4029_s1  ;;  %3876 = vmatprep.subr.bf16.mxu0 %v3875_v52 }
0x1cb0   :  { %v2997_v27 = vpop.permute.xlu0 %2996 }
0x1d0f   :  { %v3706_v17 = vpop.f32.mrb[20].mxu0 }
0x1d10   :  { %v2906_v18 = vadd.f32 %v3706_v17, %v3382_v5  ;;  %v2900_v19 = vpop.f32.mrb[21].mxu0 }
0x1d11   :  { %v2901_v21 = vadd.f32 %v3382_v5, %v2900_v19 }
0x1d13   :  { %v2988_v22 = vadd.f32 %v2985_v16, %v2901_v21 }
0x1d15   :  { %v3387_v24 = vmul.f32 -1.442695, %v2988_v22 }
0x1d17   :  { %3990 = vpow2.f32 %v3387_v24 }
0x1d21   :  { %v3991_v25 = vpop.eup %3990 }
0x1d22   :  { %v2992_v26 = vadd.f32 1.0, %v3991_v25 }
0x1d24   :  { %3992 = vrcp.f32 %v2992_v26 }
0x1d2e   :  { %v3993_v28 = vpop.eup %3992 }
0x1d2f   :  { %v2999_v29 = vmul.f32 %v3993_v28, %v2997_v27  ;;  %v3006_v33 = vsub.f32 1.0, %v3993_v28  ;;  %v3012_v35 = vmul.f32 0.0, %v3993_v28 }
0x1d31   :  { %3001 = vrot.lane.b32.xlu1 %v2999_v29, %s4030_s22 }
0x1da3   :  { %v3002_v58 = vpop.permute.xlu1 %3001 }
0x1da4   :  { %v3004_v30 = vadd.f32 %v3002_v58, %v2901_v21 }
0x1da6   :  { %3994 = vtanh.f32 %v3004_v30 }
0x1db0   :  { %v3995_v23 = vpop.eup %3994 }
0x1db1   :  { %3008 = vrot.lane.b32.xlu0 %v3995_v23, %s4031_s26 }
0x1e23   :  { %v3009_v34 = vpop.permute.xlu0 %3008 }
0x1e24   :  { %v3011_v36 = vmul.f32 %v3009_v34, %v3006_v33 }
0x1e26   :  { %v3013_v57 = vadd.f32 %v3012_v35, %v3011_v36 }
0x1e28   :  { %3015 = vrot.lane.b32.xlu1 %v3013_v57, %s4031_s26 }
0x1e9a   :  { %v3016_v37 = vpop.permute.xlu1 %3015 }
0x1e9b   :  { %3719 = vmatmul.mubr.msk.f32.vlgmr.msra.gmra.mrb[22].mxu0 %vm292_vm5, %v3016_v37 }
0x1e9c   :  { %3878 = vmatpush3.bf16.msra.mxu0 %v3875_v52 }
0x1f6e   :  { %v3085_v38 = vpop.f32.mrb[22].mxu0 }
0x1f6f   :  { %v3086_v44 = vadd.f32 %v3386_v14, %v3085_v38  ;;  %v3720_v39 = vpop.f32.mrb[23].mxu0 }
0x1f71   :  { %3097 = vrot.lane.b32.xlu0 %v3086_v44, %s4029_s1  ;;  %v3089_v40 = vadd.f32 %v3086_v44, %v2906_v18 }
0x1f73   :  { %v3389_v32 = vmul.f32 -1.442695, %v3089_v40 }
0x1f75   :  { %3996 = vpow2.f32 %v3389_v32 }
0x1f7f   :  { %v3997_v41 = vpop.eup %3996 }
0x1f80   :  { %v3093_v42 = vadd.f32 1.0, %v3997_v41 }
0x1f82   :  { %3998 = vrcp.f32 %v3093_v42 }
0x1f8c   :  { %v3999_v43 = vpop.eup %3998 }
0x1f8d   :  { %v3107_v46 = vsub.f32 1.0, %v3999_v43  ;;  %v3113_v11 = vmul.f32 %v3999_v43, %v3013_v57 }
0x1fe3   :  { %v3098_v45 = vpop.permute.xlu0 %3097 }
0x1fe4   :  { %v3100_v47 = vmul.f32 %v3999_v43, %v3098_v45 }
0x1fe6   :  { %3102 = vrot.lane.b32.xlu1 %v3100_v47, %s4030_s22 }
0x2058   :  { %v3103_v48 = vpop.permute.xlu1 %3102 }
0x2059   :  { %v3105_v62 = vadd.f32 %v3103_v48, %v2906_v18 }
0x205b   :  { %4000 = vtanh.f32 %v3105_v62 }
0x2065   :  { %v4001_v20 = vpop.eup %4000 }
0x2066   :  { %3109 = vrot.lane.b32.xlu0 %v4001_v20, %s4031_s26 }
0x20d8   :  { %v3110_v7 = vpop.permute.xlu0 %3109 }
0x20d9   :  { %v3112_v53 = vmul.f32 %v3110_v7, %v3107_v46 }
0x20db   :  { %v3114_v12 = vadd.f32 %v3113_v11, %v3112_v53 }
0x20dd   :  { %3118 = vrot.lane.b32.xlu1 %v3114_v12, %s4031_s26  ;;  %s4002_s26 = scalar_lea.vmem %s3304_s24, 256 }
0x20de   :  { %p4003_p0 = scmp.ne.s32.totalorder %s3304_s24, %s4002_s26  ;;  %p4008_p2 = scmp.lt.s32.totalorder %s4002_s26, %s4002_s26 }
0x20e0   :  { %p4009_p3 = por %p4008_p2, %p4007_p1 }
0x20e2   :  { %p4010_p4 = pnand %p4009_p3, %p4003_p0 }
0x214f   :  { %v3119_v31 = vpop.permute.xlu1 %3118 }
0x2150   :  { %v3871_v54 = vpack.c.bf16 %v3119_v31, %v3016_v37 }
0x2152   :  { %3872 = vmatprep.subr.bf16.mxu1 %v3871_v54 }
0x2153   :  { %3874 = vmatpush3.bf16.msra.mxu1 %v3871_v54 }
0x2156   :  { %3726 = vmatmul.mubr.msk.f32.vlgmr.msra.gmra.mrb[44].mxu1 %vm292_vm5, %v3116_v55 }
0x2229   :  { %v3727_v56 = vpop.f32.mrb[44].mxu1 }
0x222a   :  { %v3194_v59 = vpop.f32.mrb[45].mxu1 }
0x222b   :  { %3732 = vmatprep.mubr.msk.f32.mxu0 %vm292_vm5, %v3194_v59 }
0x222c   :  { %3733 = vmatmul.mubr.msk.f32.vlgmr.msra.gmra.mrb[24].mxu0 %vm292_vm5, %v3727_v56 }
0x222d   :  { %4013 = shalt.err (!%p4010_p4)
}
0x222e   :  { %s4014_s2 = scalar_lea.hbm %s4706_s19, 256 }
0x222f   :  { %p4015_p5 = scmp.ne.s32.totalorder %s4706_s19, %s4014_s2  ;;  %p4018_p6 = scmp.lt.u32.totalorder %s4014_s2, %s4706_s19 }
0x2231   :  { %p4020_p7 = pnand %p4018_p6, %p4015_p5 }
0x2233   :  { %4023 = shalt.err (!%p4020_p7)
}
0x2234   :  { %s4034_s4 = smov 128   ;;  %s4035_s7 = smov 8   ;;  %v3392_v60 = vld [vmem:[%s4704_s17] ss:$0 sm:$0xff]  ;;  %vm3293_vm12 = vcmask 195584  }
0x2235   :  { %3309 = dma.vmem_to_hbm [thread:$0]  %s3304_s24, 256, %s4706_s19, [#allocation3], %s4034_s4, %s4034_s4, %s4035_s7  }
0x22ff   :  { %v3734_v61 = vpop.f32.mrb[24].mxu0 }
0x2300   :  { %v3290_v63 = vadd.f32 %v3734_v61, %v3392_v60  ;;  %v3284_v0 = vpop.f32.mrb[25].mxu0 }
0x2301   :  { %v3285_v1 = vadd.f32 %v3392_v60, %v3284_v0 }
0x2302   :  { %3295 = vst.msk [vmem:[%s4707_s20 + $0x8] sm:$0xff] %vm3293_vm12, %v3290_v63 }
0x2303   :  { %3294 = vst.msk [vmem:[%s4707_s20] sm:$0xff] %vm3293_vm12, %v3285_v1 }
0x2304   :  { %4024 = dma.done.wait [#allocation3], 256  }
0x2305   :  { %4025 = vsyncadd [#allocation3], 4294967040 }
0x2306   :  { %3319 = vsyncpa [#allocation3], 1 }

</bundles_post_ra>
